<compile_context>
chip_gen: v6e
topology: v6e:2x2x1
jax: 0.10.0
libtpu: 0.0.40
codegen_flags: <defaults>
</compile_context>

<pallas_src>
import math
from functools import partial

import jax
import jax.numpy as jnp
from jax import lax
from jax.experimental import pallas as pl
from jax.experimental.pallas import tpu as pltpu

_LN_EPS = 1e-5                    # nn.LayerNorm default eps
_INV_SQRT2 = 1.0 / math.sqrt(2.0)


def _round_up(a, b):
    return (a + b - 1) // b * b


def _layernorm(x, gamma, beta, eps=_LN_EPS):
    mu = jnp.mean(x, axis=-1, keepdims=True)
    xc = x - mu
    var = jnp.mean(xc * xc, axis=-1, keepdims=True)
    return xc * lax.rsqrt(var + eps) * gamma + beta


def _gelu_exact(x):
    # nn.GELU() default = exact erf-based GELU
    return 0.5 * x * (1.0 + lax.erf(x * _INV_SQRT2))


# ----------------------------------------------------------------------------
# Kernel 1: x + Attention(LayerNorm1(x)), one batch element per grid step.
# Heads are handled with full-lane-width masks (no narrow lane slices, no
# in-kernel reshapes), so everything stays on plain 2-D MXU dots.
# ----------------------------------------------------------------------------
def _attn_block_kernel(x_ref, g1_ref, be1_ref, wq_ref, wk_ref, wv_ref,
                       wp_ref, bp_ref, o_ref, *, num_heads, scale):
    x = x_ref[0].astype(jnp.float32)                      # (N, C)
    N, C = x.shape
    D = C // num_heads

    xn = _layernorm(x, g1_ref[...], be1_ref[...])

    q = jnp.dot(xn, wq_ref[...], preferred_element_type=jnp.float32)
    k = jnp.dot(xn, wk_ref[...], preferred_element_type=jnp.float32)
    v = jnp.dot(xn, wv_ref[...], preferred_element_type=jnp.float32)

    lane = lax.broadcasted_iota(jnp.int32, (1, C), 1)
    acc = jnp.zeros((N, C), jnp.float32)
    for h in range(num_heads):                            # static, unrolled
        m = ((lane >= h * D) & (lane < (h + 1) * D)).astype(jnp.float32)  # (1, C)
        qh = q * m
        kh = k * m
        vh = v * m
        # q_h @ k_h^T : masked columns contribute 0 to the contraction.
        s = lax.dot_general(qh, kh, (((1,), (1,)), ((), ())),
                            preferred_element_type=jnp.float32) * scale   # (N, N)
        s = s - jnp.max(s, axis=-1, keepdims=True)
        p = jnp.exp(s)
        p = p / jnp.sum(p, axis=-1, keepdims=True)
        # p @ v_h lands only in head h's column slice -> accumulate.
        acc = acc + jnp.dot(p, vh, preferred_element_type=jnp.float32)

    y = jnp.dot(acc, wp_ref[...], preferred_element_type=jnp.float32) + bp_ref[...]
    o_ref[0] = (x + y).astype(o_ref.dtype)


def _attn_residual(x, g1, be1, wq, wk, wv, wp, bp, *, num_heads):
    B, N, C = x.shape
    D = C // num_heads
    scale = D ** (-0.5)
    kern = partial(_attn_block_kernel, num_heads=num_heads, scale=scale)
    return pl.pallas_call(
        kern,
        out_shape=jax.ShapeDtypeStruct((B, N, C), x.dtype),
        grid_spec=pl.GridSpec(
            grid=(B,),
            in_specs=[
                pl.BlockSpec((1, N, C), lambda b: (b, 0, 0)),   # x slab
                pl.BlockSpec((1, C), lambda b: (0, 0)),         # LN1 gamma
                pl.BlockSpec((1, C), lambda b: (0, 0)),         # LN1 beta
                pl.BlockSpec((C, C), lambda b: (0, 0)),         # Wq^T (resident)
                pl.BlockSpec((C, C), lambda b: (0, 0)),         # Wk^T
                pl.BlockSpec((C, C), lambda b: (0, 0)),         # Wv^T
                pl.BlockSpec((C, C), lambda b: (0, 0)),         # Wproj^T
                pl.BlockSpec((1, C), lambda b: (0, 0)),         # proj bias
            ],
            out_specs=pl.BlockSpec((1, N, C), lambda b: (b, 0, 0)),
        ),
        compiler_params=pltpu.CompilerParams(dimension_semantics=("parallel",)),
    )(x, g1.reshape(1, C), be1.reshape(1, C),
      wq.T, wk.T, wv.T, wp.T, bp.reshape(1, C))


# ----------------------------------------------------------------------------
# Kernel 2: x + Mlp(LayerNorm2(x)) over row tiles of the flattened (B*N, C).
# ----------------------------------------------------------------------------
def _mlp_block_kernel(x_ref, g2_ref, be2_ref, w1_ref, b1_ref, w2_ref, b2_ref, o_ref):
    x = x_ref[...].astype(jnp.float32)                    # (tm, C)
    xn = _layernorm(x, g2_ref[...], be2_ref[...])
    # fc1 (weights may be bf16; accumulate in f32 on the MXU)
    h = jnp.dot(xn.astype(w1_ref.dtype), w1_ref[...],
                preferred_element_type=jnp.float32) + b1_ref[...]
    h = _gelu_exact(h)                                    # drop p=0 -> identity
    # fc2
    y = jnp.dot(h.astype(w2_ref.dtype), w2_ref[...],
                preferred_element_type=jnp.float32) + b2_ref[...]
    o_ref[...] = (x + y).astype(o_ref.dtype)              # residual; drop p=0


def _mlp_residual(x, g2, be2, w1, b1, w2, b2, *, tm=256,
                  compute_dtype=jnp.float32):
    B, N, C = x.shape
    Hf = w1.shape[0]
    M = B * N

    # Lane-dense hidden dim: pad H up to a multiple of 128 (zero cols/rows, exact).
    Hp = _round_up(Hf, 128)
    w1_t = jnp.zeros((C, Hp), compute_dtype).at[:, :Hf].set(w1.T.astype(compute_dtype))
    b1_r = jnp.zeros((1, Hp), jnp.float32).at[:, :Hf].set(b1.astype(jnp.float32))
    w2_t = jnp.zeros((Hp, C), compute_dtype).at[:Hf, :].set(w2.T.astype(compute_dtype))
    b2_r = b2.reshape(1, C).astype(jnp.float32)

    # Big row tiles amortize the ~0.35us/step pipeline overhead; cap the tile so the
    # grid stays >= 2 when M allows (keeps both v7x TensorCores busy). The tail is
    # handled by zero-padding rows (LayerNorm(0)+eps is finite; rows sliced off below).
    tm_eff = max(8, min(tm, _round_up(pl.cdiv(M, 2), 8)))
    M_pad = _round_up(M, tm_eff)
    x2 = x.reshape(M, C)
    if M_pad != M:
        x2 = jnp.concatenate([x2, jnp.zeros((M_pad - M, C), x2.dtype)], axis=0)

    out = pl.pallas_call(
        _mlp_block_kernel,
        out_shape=jax.ShapeDtypeStruct((M_pad, C), x.dtype),
        grid_spec=pl.GridSpec(
            grid=(M_pad // tm_eff,),
            in_specs=[
                pl.BlockSpec((tm_eff, C), lambda i: (i, 0)),   # x row tile
                pl.BlockSpec((1, C), lambda i: (0, 0)),        # LN2 gamma
                pl.BlockSpec((1, C), lambda i: (0, 0)),        # LN2 beta
                pl.BlockSpec((C, Hp), lambda i: (0, 0)),       # W1^T (resident)
                pl.BlockSpec((1, Hp), lambda i: (0, 0)),       # b1
                pl.BlockSpec((Hp, C), lambda i: (0, 0)),       # W2^T (resident)
                pl.BlockSpec((1, C), lambda i: (0, 0)),        # b2
            ],
            out_specs=pl.BlockSpec((tm_eff, C), lambda i: (i, 0)),
        ),
        compiler_params=pltpu.CompilerParams(dimension_semantics=("parallel",)),
    )(x2, g2.reshape(1, C), be2.reshape(1, C), w1_t, b1_r, w2_t, b2_r)

    return out[:M].reshape(B, N, C)


def block_forward(x, p, *, num_heads, tm=256, compute_dtype=jnp.float32):
    """Full Block forward: x + attn(LN1(x)); then x + mlp(LN2(x))."""
    x = _attn_residual(x, p["ln1_g"], p["ln1_b"], p["wq"], p["wk"], p["wv"],
                       p["wp"], p["bp"], num_heads=num_heads)
    x = _mlp_residual(x, p["ln2_g"], p["ln2_b"], p["w1"], p["b1"], p["w2"], p["b2"],
                      tm=tm, compute_dtype=compute_dtype)
    return x


# ----------------------------------------------------------------------------
# Pure-JAX reference mirroring the PyTorch forward.
# ----------------------------------------------------------------------------
def block_reference(x, p, *, num_heads):
    B, N, C = x.shape
    D = C // num_heads
    scale = D ** (-0.5)

    xn = _layernorm(x, p["ln1_g"], p["ln1_b"])
    q = xn @ p["wq"].T
    k = xn @ p["wk"].T
    v = xn @ p["wv"].T

    def split(t):  # (B, N, C) -> (B, H, N, D)
        return t.reshape(B, N, num_heads, D).transpose(0, 2, 1, 3)

    qh, kh, vh = split(q), split(k), split(v)
    attn = jnp.einsum("bhnd,bhmd->bhnm", qh, kh) * scale
    attn = attn - jnp.max(attn, axis=-1, keepdims=True)
    attn = jnp.exp(attn)
    attn = attn / jnp.sum(attn, axis=-1, keepdims=True)
    y = jnp.einsum("bhnm,bhmd->bhnd", attn, vh)
    y = y.transpose(0, 2, 1, 3).reshape(B, N, C)
    y = y @ p["wp"].T + p["bp"]
    x = x + y

    xn2 = _layernorm(x, p["ln2_g"], p["ln2_b"])
    h = xn2 @ p["w1"].T + p["b1"]
    h = _gelu_exact(h)
    y2 = h @ p["w2"].T + p["b2"]
    return x + y2


if __name__ == "__main__":
    # Small shapes consistent with Block: batch=2, tokens=8, dim=32, heads=8,
    # mlp_ratio=4 -> hidden=128 (head_dim=4).
    B, N, C, num_heads = 2, 8, 32, 8
    Hf = int(C * 4.0)

    key = jax.random.PRNGKey(0)
    keys = jax.random.split(key, 12)
    x = jax.random.normal(keys[0], (B, N, C), dtype=jnp.float32)

    def lin_w(k, out_f, in_f):
        bound = 1.0 / math.sqrt(in_f)
        return jax.random.uniform(k, (out_f, in_f), jnp.float32, -bound, bound)

    wqkv = lin_w(keys[1], 3 * C, C)          # qkv_bias=False (no bias)
    params = dict(
        ln1_g=1.0 + 0.1 * jax.random.normal(keys[2], (C,), jnp.float32),
        ln1_b=0.1 * jax.random.normal(keys[3], (C,), jnp.float32),
        wq=wqkv[0:C], wk=wqkv[C:2 * C], wv=wqkv[2 * C:3 * C],
        wp=lin_w(keys[4], C, C),
        bp=jax.random.uniform(keys[5], (C,), jnp.float32,
                              -1.0 / math.sqrt(C), 1.0 / math.sqrt(C)),
        ln2_g=1.0 + 0.1 * jax.random.normal(keys[6], (C,), jnp.float32),
        ln2_b=0.1 * jax.random.normal(keys[7], (C,), jnp.float32),
        w1=lin_w(keys[8], Hf, C),
        b1=jax.random.uniform(keys[9], (Hf,), jnp.float32,
                              -1.0 / math.sqrt(C), 1.0 / math.sqrt(C)),
        w2=lin_w(keys[10], C, Hf),
        b2=jax.random.uniform(keys[11], (C,), jnp.float32,
                              -1.0 / math.sqrt(Hf), 1.0 / math.sqrt(Hf)),
    )

    y = block_forward(x, params, num_heads=num_heads)
    y = jax.block_until_ready(y)

    y_ref = block_reference(x, params, num_heads=num_heads)
    assert y.shape == (B, N, C)
    assert jnp.allclose(y, y_ref, atol=1e-3, rtol=1e-3), "mismatch vs reference"

    print("KERNEL_OK")
</pallas_src>

<mosaic_0001>
module attributes {stable_mosaic.version = 11 : i64} {
  func.func @_attn_block_kernel(%arg0: i32, %arg1: memref<1x8x32xf32, #tpu.memory_space<vmem>>, %arg2: memref<1x32xf32, #tpu.memory_space<vmem>>, %arg3: memref<1x32xf32, #tpu.memory_space<vmem>>, %arg4: memref<32x32xf32, #tpu.memory_space<vmem>>, %arg5: memref<32x32xf32, #tpu.memory_space<vmem>>, %arg6: memref<32x32xf32, #tpu.memory_space<vmem>>, %arg7: memref<32x32xf32, #tpu.memory_space<vmem>>, %arg8: memref<1x32xf32, #tpu.memory_space<vmem>>, %arg9: memref<1x8x32xf32, #tpu.memory_space<vmem>>) attributes {dimension_semantics = [#tpu.dimension_semantics<parallel>], iteration_bounds = array<i64: 2>, scalar_prefetch = 0 : i64, scratch_operands = 0 : i64, tpu.core_type = #tpu.core_type<tc>, window_params = [{transform_indices = @transform_0, window_bounds = array<i64: 1, 8, 32>}, {pipeline_mode = #tpu.pipeline_mode<synchronous>, transform_indices = @transform_1, window_bounds = array<i64: 1, 32>}, {pipeline_mode = #tpu.pipeline_mode<synchronous>, transform_indices = @transform_2, window_bounds = array<i64: 1, 32>}, {pipeline_mode = #tpu.pipeline_mode<synchronous>, transform_indices = @transform_3, window_bounds = array<i64: 32, 32>}, {pipeline_mode = #tpu.pipeline_mode<synchronous>, transform_indices = @transform_4, window_bounds = array<i64: 32, 32>}, {pipeline_mode = #tpu.pipeline_mode<synchronous>, transform_indices = @transform_5, window_bounds = array<i64: 32, 32>}, {pipeline_mode = #tpu.pipeline_mode<synchronous>, transform_indices = @transform_6, window_bounds = array<i64: 32, 32>}, {pipeline_mode = #tpu.pipeline_mode<synchronous>, transform_indices = @transform_7, window_bounds = array<i64: 1, 32>}, {transform_indices = @transform_8, window_bounds = array<i64: 1, 8, 32>}]} {
    %c0 = arith.constant 0 : index
    %c0_0 = arith.constant 0 : index
    %c0_1 = arith.constant 0 : index
    %0 = vector.load %arg1[%c0, %c0_0, %c0_1] : memref<1x8x32xf32, #tpu.memory_space<vmem>>, vector<1x8x32xf32>
    %1 = vector.shape_cast %0 : vector<1x8x32xf32> to vector<8x32xf32>
    %c0_2 = arith.constant 0 : index
    %c0_3 = arith.constant 0 : index
    %2 = vector.load %arg2[%c0_2, %c0_3] : memref<1x32xf32, #tpu.memory_space<vmem>>, vector<1x32xf32>
    %c0_4 = arith.constant 0 : index
    %c0_5 = arith.constant 0 : index
    %3 = vector.load %arg3[%c0_4, %c0_5] : memref<1x32xf32, #tpu.memory_space<vmem>>, vector<1x32xf32>
    %cst = arith.constant dense<0.000000e+00> : vector<8xf32>
    %4 = vector.multi_reduction <add>, %1, %cst [1] : vector<8x32xf32> to vector<8xf32>
    %5 = vector.shape_cast %4 : vector<8xf32> to vector<8x1xf32>
    %cst_6 = arith.constant 3.200000e+01 : f32
    %6 = vector.broadcast %cst_6 : f32 to vector<8x1xf32>
    %7 = arith.divf %5, %6 : vector<8x1xf32>
    %8 = vector.broadcast %7 : vector<8x1xf32> to vector<8x32xf32>
    %9 = arith.subf %1, %8 : vector<8x32xf32>
    %10 = arith.mulf %9, %9 : vector<8x32xf32>
    %cst_7 = arith.constant dense<0.000000e+00> : vector<8xf32>
    %11 = vector.multi_reduction <add>, %10, %cst_7 [1] : vector<8x32xf32> to vector<8xf32>
    %12 = vector.shape_cast %11 : vector<8xf32> to vector<8x1xf32>
    %cst_8 = arith.constant 3.200000e+01 : f32
    %13 = vector.broadcast %cst_8 : f32 to vector<8x1xf32>
    %14 = arith.divf %12, %13 : vector<8x1xf32>
    %cst_9 = arith.constant 9.99999974E-6 : f32
    %15 = vector.broadcast %cst_9 : f32 to vector<8x1xf32>
    %16 = arith.addf %14, %15 : vector<8x1xf32>
    %17 = math.rsqrt %16 : vector<8x1xf32>
    %18 = vector.broadcast %17 : vector<8x1xf32> to vector<8x32xf32>
    %19 = arith.mulf %9, %18 : vector<8x32xf32>
    %20 = vector.broadcast %2 : vector<1x32xf32> to vector<8x32xf32>
    %21 = arith.mulf %19, %20 : vector<8x32xf32>
    %22 = vector.broadcast %3 : vector<1x32xf32> to vector<8x32xf32>
    %23 = arith.addf %21, %22 : vector<8x32xf32>
    %c0_10 = arith.constant 0 : index
    %c0_11 = arith.constant 0 : index
    %24 = vector.load %arg4[%c0_10, %c0_11] : memref<32x32xf32, #tpu.memory_space<vmem>>, vector<32x32xf32>
    %cst_12 = arith.constant dense<0.000000e+00> : vector<8x32xf32>
    %25 = tpu.matmul %23, %24, %cst_12 {dimension_numbers = #tpu.dot_dimension_numbers<[1], [0], [0], [1], [0, 0, 1, 1], [], []>} : vector<8x32xf32>, vector<32x32xf32>, vector<8x32xf32> -> vector<8x32xf32>
    %c0_13 = arith.constant 0 : index
    %c0_14 = arith.constant 0 : index
    %26 = vector.load %arg5[%c0_13, %c0_14] : memref<32x32xf32, #tpu.memory_space<vmem>>, vector<32x32xf32>
    %cst_15 = arith.constant dense<0.000000e+00> : vector<8x32xf32>
    %27 = tpu.matmul %23, %26, %cst_15 {dimension_numbers = #tpu.dot_dimension_numbers<[1], [0], [0], [1], [0, 0, 1, 1], [], []>} : vector<8x32xf32>, vector<32x32xf32>, vector<8x32xf32> -> vector<8x32xf32>
    %c0_16 = arith.constant 0 : index
    %c0_17 = arith.constant 0 : index
    %28 = vector.load %arg6[%c0_16, %c0_17] : memref<32x32xf32, #tpu.memory_space<vmem>>, vector<32x32xf32>
    %cst_18 = arith.constant dense<0.000000e+00> : vector<8x32xf32>
    %29 = tpu.matmul %23, %28, %cst_18 {dimension_numbers = #tpu.dot_dimension_numbers<[1], [0], [0], [1], [0, 0, 1, 1], [], []>} : vector<8x32xf32>, vector<32x32xf32>, vector<8x32xf32> -> vector<8x32xf32>
    %30 = tpu.iota {dimensions = array<i32: 1>} : vector<1x32xi32>
    %cst_19 = arith.constant 0.000000e+00 : f32
    %31 = vector.broadcast %cst_19 : f32 to vector<8x32xf32>
    %c0_i32 = arith.constant 0 : i32
    %32 = vector.broadcast %c0_i32 : i32 to vector<1x32xi32>
    %33 = arith.cmpi sge, %30, %32 : vector<1x32xi32>
    %c4_i32 = arith.constant 4 : i32
    %34 = vector.broadcast %c4_i32 : i32 to vector<1x32xi32>
    %35 = arith.cmpi slt, %30, %34 : vector<1x32xi32>
    %36 = arith.andi %33, %35 : vector<1x32xi1>
    %37 = arith.extui %36 : vector<1x32xi1> to vector<1x32xi32>
    %38 = arith.sitofp %37 : vector<1x32xi32> to vector<1x32xf32>
    %39 = vector.broadcast %38 : vector<1x32xf32> to vector<8x32xf32>
    %40 = arith.mulf %25, %39 : vector<8x32xf32>
    %41 = vector.broadcast %38 : vector<1x32xf32> to vector<8x32xf32>
    %42 = arith.mulf %27, %41 : vector<8x32xf32>
    %43 = vector.broadcast %38 : vector<1x32xf32> to vector<8x32xf32>
    %44 = arith.mulf %29, %43 : vector<8x32xf32>
    %cst_20 = arith.constant dense<0.000000e+00> : vector<8x8xf32>
    %45 = tpu.matmul %40, %42, %cst_20 {dimension_numbers = #tpu.dot_dimension_numbers<[1], [1], [0], [0], [0, 0, 1, 0], [], []>} : vector<8x32xf32>, vector<8x32xf32>, vector<8x8xf32> -> vector<8x8xf32>
    %cst_21 = arith.constant 5.000000e-01 : f32
    %46 = vector.broadcast %cst_21 : f32 to vector<8x8xf32>
    %47 = arith.mulf %45, %46 : vector<8x8xf32>
    %cst_22 = arith.constant dense<0xFF800000> : vector<8xf32>
    %48 = vector.multi_reduction <maximumf>, %47, %cst_22 [1] : vector<8x8xf32> to vector<8xf32>
    %49 = vector.shape_cast %48 : vector<8xf32> to vector<8x1xf32>
    %50 = vector.broadcast %49 : vector<8x1xf32> to vector<8x8xf32>
    %51 = arith.subf %47, %50 : vector<8x8xf32>
    %52 = math.exp %51 : vector<8x8xf32>
    %cst_23 = arith.constant dense<0.000000e+00> : vector<8xf32>
    %53 = vector.multi_reduction <add>, %52, %cst_23 [1] : vector<8x8xf32> to vector<8xf32>
    %54 = vector.shape_cast %53 : vector<8xf32> to vector<8x1xf32>
    %55 = vector.broadcast %54 : vector<8x1xf32> to vector<8x8xf32>
    %56 = arith.divf %52, %55 : vector<8x8xf32>
    %cst_24 = arith.constant dense<0.000000e+00> : vector<8x32xf32>
    %57 = tpu.matmul %56, %44, %cst_24 {dimension_numbers = #tpu.dot_dimension_numbers<[1], [0], [0], [1], [0, 0, 1, 1], [], []>} : vector<8x8xf32>, vector<8x32xf32>, vector<8x32xf32> -> vector<8x32xf32>
    %58 = arith.addf %31, %57 : vector<8x32xf32>
    %c4_i32_25 = arith.constant 4 : i32
    %59 = vector.broadcast %c4_i32_25 : i32 to vector<1x32xi32>
    %60 = arith.cmpi sge, %30, %59 : vector<1x32xi32>
    %c8_i32 = arith.constant 8 : i32
    %61 = vector.broadcast %c8_i32 : i32 to vector<1x32xi32>
    %62 = arith.cmpi slt, %30, %61 : vector<1x32xi32>
    %63 = arith.andi %60, %62 : vector<1x32xi1>
    %64 = arith.extui %63 : vector<1x32xi1> to vector<1x32xi32>
    %65 = arith.sitofp %64 : vector<1x32xi32> to vector<1x32xf32>
    %66 = vector.broadcast %65 : vector<1x32xf32> to vector<8x32xf32>
    %67 = arith.mulf %25, %66 : vector<8x32xf32>
    %68 = vector.broadcast %65 : vector<1x32xf32> to vector<8x32xf32>
    %69 = arith.mulf %27, %68 : vector<8x32xf32>
    %70 = vector.broadcast %65 : vector<1x32xf32> to vector<8x32xf32>
    %71 = arith.mulf %29, %70 : vector<8x32xf32>
    %cst_26 = arith.constant dense<0.000000e+00> : vector<8x8xf32>
    %72 = tpu.matmul %67, %69, %cst_26 {dimension_numbers = #tpu.dot_dimension_numbers<[1], [1], [0], [0], [0, 0, 1, 0], [], []>} : vector<8x32xf32>, vector<8x32xf32>, vector<8x8xf32> -> vector<8x8xf32>
    %cst_27 = arith.constant 5.000000e-01 : f32
    %73 = vector.broadcast %cst_27 : f32 to vector<8x8xf32>
    %74 = arith.mulf %72, %73 : vector<8x8xf32>
    %cst_28 = arith.constant dense<0xFF800000> : vector<8xf32>
    %75 = vector.multi_reduction <maximumf>, %74, %cst_28 [1] : vector<8x8xf32> to vector<8xf32>
    %76 = vector.shape_cast %75 : vector<8xf32> to vector<8x1xf32>
    %77 = vector.broadcast %76 : vector<8x1xf32> to vector<8x8xf32>
    %78 = arith.subf %74, %77 : vector<8x8xf32>
    %79 = math.exp %78 : vector<8x8xf32>
    %cst_29 = arith.constant dense<0.000000e+00> : vector<8xf32>
    %80 = vector.multi_reduction <add>, %79, %cst_29 [1] : vector<8x8xf32> to vector<8xf32>
    %81 = vector.shape_cast %80 : vector<8xf32> to vector<8x1xf32>
    %82 = vector.broadcast %81 : vector<8x1xf32> to vector<8x8xf32>
    %83 = arith.divf %79, %82 : vector<8x8xf32>
    %cst_30 = arith.constant dense<0.000000e+00> : vector<8x32xf32>
    %84 = tpu.matmul %83, %71, %cst_30 {dimension_numbers = #tpu.dot_dimension_numbers<[1], [0], [0], [1], [0, 0, 1, 1], [], []>} : vector<8x8xf32>, vector<8x32xf32>, vector<8x32xf32> -> vector<8x32xf32>
    %85 = arith.addf %58, %84 : vector<8x32xf32>
    %c8_i32_31 = arith.constant 8 : i32
    %86 = vector.broadcast %c8_i32_31 : i32 to vector<1x32xi32>
    %87 = arith.cmpi sge, %30, %86 : vector<1x32xi32>
    %c12_i32 = arith.constant 12 : i32
    %88 = vector.broadcast %c12_i32 : i32 to vector<1x32xi32>
    %89 = arith.cmpi slt, %30, %88 : vector<1x32xi32>
    %90 = arith.andi %87, %89 : vector<1x32xi1>
    %91 = arith.extui %90 : vector<1x32xi1> to vector<1x32xi32>
    %92 = arith.sitofp %91 : vector<1x32xi32> to vector<1x32xf32>
    %93 = vector.broadcast %92 : vector<1x32xf32> to vector<8x32xf32>
    %94 = arith.mulf %25, %93 : vector<8x32xf32>
    %95 = vector.broadcast %92 : vector<1x32xf32> to vector<8x32xf32>
    %96 = arith.mulf %27, %95 : vector<8x32xf32>
    %97 = vector.broadcast %92 : vector<1x32xf32> to vector<8x32xf32>
    %98 = arith.mulf %29, %97 : vector<8x32xf32>
    %cst_32 = arith.constant dense<0.000000e+00> : vector<8x8xf32>
    %99 = tpu.matmul %94, %96, %cst_32 {dimension_numbers = #tpu.dot_dimension_numbers<[1], [1], [0], [0], [0, 0, 1, 0], [], []>} : vector<8x32xf32>, vector<8x32xf32>, vector<8x8xf32> -> vector<8x8xf32>
    %cst_33 = arith.constant 5.000000e-01 : f32
    %100 = vector.broadcast %cst_33 : f32 to vector<8x8xf32>
    %101 = arith.mulf %99, %100 : vector<8x8xf32>
    %cst_34 = arith.constant dense<0xFF800000> : vector<8xf32>
    %102 = vector.multi_reduction <maximumf>, %101, %cst_34 [1] : vector<8x8xf32> to vector<8xf32>
    %103 = vector.shape_cast %102 : vector<8xf32> to vector<8x1xf32>
    %104 = vector.broadcast %103 : vector<8x1xf32> to vector<8x8xf32>
    %105 = arith.subf %101, %104 : vector<8x8xf32>
    %106 = math.exp %105 : vector<8x8xf32>
    %cst_35 = arith.constant dense<0.000000e+00> : vector<8xf32>
    %107 = vector.multi_reduction <add>, %106, %cst_35 [1] : vector<8x8xf32> to vector<8xf32>
    %108 = vector.shape_cast %107 : vector<8xf32> to vector<8x1xf32>
    %109 = vector.broadcast %108 : vector<8x1xf32> to vector<8x8xf32>
    %110 = arith.divf %106, %109 : vector<8x8xf32>
    %cst_36 = arith.constant dense<0.000000e+00> : vector<8x32xf32>
    %111 = tpu.matmul %110, %98, %cst_36 {dimension_numbers = #tpu.dot_dimension_numbers<[1], [0], [0], [1], [0, 0, 1, 1], [], []>} : vector<8x8xf32>, vector<8x32xf32>, vector<8x32xf32> -> vector<8x32xf32>
    %112 = arith.addf %85, %111 : vector<8x32xf32>
    %c12_i32_37 = arith.constant 12 : i32
    %113 = vector.broadcast %c12_i32_37 : i32 to vector<1x32xi32>
    %114 = arith.cmpi sge, %30, %113 : vector<1x32xi32>
    %c16_i32 = arith.constant 16 : i32
    %115 = vector.broadcast %c16_i32 : i32 to vector<1x32xi32>
    %116 = arith.cmpi slt, %30, %115 : vector<1x32xi32>
    %117 = arith.andi %114, %116 : vector<1x32xi1>
    %118 = arith.extui %117 : vector<1x32xi1> to vector<1x32xi32>
    %119 = arith.sitofp %118 : vector<1x32xi32> to vector<1x32xf32>
    %120 = vector.broadcast %119 : vector<1x32xf32> to vector<8x32xf32>
    %121 = arith.mulf %25, %120 : vector<8x32xf32>
    %122 = vector.broadcast %119 : vector<1x32xf32> to vector<8x32xf32>
    %123 = arith.mulf %27, %122 : vector<8x32xf32>
    %124 = vector.broadcast %119 : vector<1x32xf32> to vector<8x32xf32>
    %125 = arith.mulf %29, %124 : vector<8x32xf32>
    %cst_38 = arith.constant dense<0.000000e+00> : vector<8x8xf32>
    %126 = tpu.matmul %121, %123, %cst_38 {dimension_numbers = #tpu.dot_dimension_numbers<[1], [1], [0], [0], [0, 0, 1, 0], [], []>} : vector<8x32xf32>, vector<8x32xf32>, vector<8x8xf32> -> vector<8x8xf32>
    %cst_39 = arith.constant 5.000000e-01 : f32
    %127 = vector.broadcast %cst_39 : f32 to vector<8x8xf32>
    %128 = arith.mulf %126, %127 : vector<8x8xf32>
    %cst_40 = arith.constant dense<0xFF800000> : vector<8xf32>
    %129 = vector.multi_reduction <maximumf>, %128, %cst_40 [1] : vector<8x8xf32> to vector<8xf32>
    %130 = vector.shape_cast %129 : vector<8xf32> to vector<8x1xf32>
    %131 = vector.broadcast %130 : vector<8x1xf32> to vector<8x8xf32>
    %132 = arith.subf %128, %131 : vector<8x8xf32>
    %133 = math.exp %132 : vector<8x8xf32>
    %cst_41 = arith.constant dense<0.000000e+00> : vector<8xf32>
    %134 = vector.multi_reduction <add>, %133, %cst_41 [1] : vector<8x8xf32> to vector<8xf32>
    %135 = vector.shape_cast %134 : vector<8xf32> to vector<8x1xf32>
    %136 = vector.broadcast %135 : vector<8x1xf32> to vector<8x8xf32>
    %137 = arith.divf %133, %136 : vector<8x8xf32>
    %cst_42 = arith.constant dense<0.000000e+00> : vector<8x32xf32>
    %138 = tpu.matmul %137, %125, %cst_42 {dimension_numbers = #tpu.dot_dimension_numbers<[1], [0], [0], [1], [0, 0, 1, 1], [], []>} : vector<8x8xf32>, vector<8x32xf32>, vector<8x32xf32> -> vector<8x32xf32>
    %139 = arith.addf %112, %138 : vector<8x32xf32>
    %c16_i32_43 = arith.constant 16 : i32
    %140 = vector.broadcast %c16_i32_43 : i32 to vector<1x32xi32>
    %141 = arith.cmpi sge, %30, %140 : vector<1x32xi32>
    %c20_i32 = arith.constant 20 : i32
    %142 = vector.broadcast %c20_i32 : i32 to vector<1x32xi32>
    %143 = arith.cmpi slt, %30, %142 : vector<1x32xi32>
    %144 = arith.andi %141, %143 : vector<1x32xi1>
    %145 = arith.extui %144 : vector<1x32xi1> to vector<1x32xi32>
    %146 = arith.sitofp %145 : vector<1x32xi32> to vector<1x32xf32>
    %147 = vector.broadcast %146 : vector<1x32xf32> to vector<8x32xf32>
    %148 = arith.mulf %25, %147 : vector<8x32xf32>
    %149 = vector.broadcast %146 : vector<1x32xf32> to vector<8x32xf32>
    %150 = arith.mulf %27, %149 : vector<8x32xf32>
    %151 = vector.broadcast %146 : vector<1x32xf32> to vector<8x32xf32>
    %152 = arith.mulf %29, %151 : vector<8x32xf32>
    %cst_44 = arith.constant dense<0.000000e+00> : vector<8x8xf32>
    %153 = tpu.matmul %148, %150, %cst_44 {dimension_numbers = #tpu.dot_dimension_numbers<[1], [1], [0], [0], [0, 0, 1, 0], [], []>} : vector<8x32xf32>, vector<8x32xf32>, vector<8x8xf32> -> vector<8x8xf32>
    %cst_45 = arith.constant 5.000000e-01 : f32
    %154 = vector.broadcast %cst_45 : f32 to vector<8x8xf32>
    %155 = arith.mulf %153, %154 : vector<8x8xf32>
    %cst_46 = arith.constant dense<0xFF800000> : vector<8xf32>
    %156 = vector.multi_reduction <maximumf>, %155, %cst_46 [1] : vector<8x8xf32> to vector<8xf32>
    %157 = vector.shape_cast %156 : vector<8xf32> to vector<8x1xf32>
    %158 = vector.broadcast %157 : vector<8x1xf32> to vector<8x8xf32>
    %159 = arith.subf %155, %158 : vector<8x8xf32>
    %160 = math.exp %159 : vector<8x8xf32>
    %cst_47 = arith.constant dense<0.000000e+00> : vector<8xf32>
    %161 = vector.multi_reduction <add>, %160, %cst_47 [1] : vector<8x8xf32> to vector<8xf32>
    %162 = vector.shape_cast %161 : vector<8xf32> to vector<8x1xf32>
    %163 = vector.broadcast %162 : vector<8x1xf32> to vector<8x8xf32>
    %164 = arith.divf %160, %163 : vector<8x8xf32>
    %cst_48 = arith.constant dense<0.000000e+00> : vector<8x32xf32>
    %165 = tpu.matmul %164, %152, %cst_48 {dimension_numbers = #tpu.dot_dimension_numbers<[1], [0], [0], [1], [0, 0, 1, 1], [], []>} : vector<8x8xf32>, vector<8x32xf32>, vector<8x32xf32> -> vector<8x32xf32>
    %166 = arith.addf %139, %165 : vector<8x32xf32>
    %c20_i32_49 = arith.constant 20 : i32
    %167 = vector.broadcast %c20_i32_49 : i32 to vector<1x32xi32>
    %168 = arith.cmpi sge, %30, %167 : vector<1x32xi32>
    %c24_i32 = arith.constant 24 : i32
    %169 = vector.broadcast %c24_i32 : i32 to vector<1x32xi32>
    %170 = arith.cmpi slt, %30, %169 : vector<1x32xi32>
    %171 = arith.andi %168, %170 : vector<1x32xi1>
    %172 = arith.extui %171 : vector<1x32xi1> to vector<1x32xi32>
    %173 = arith.sitofp %172 : vector<1x32xi32> to vector<1x32xf32>
    %174 = vector.broadcast %173 : vector<1x32xf32> to vector<8x32xf32>
    %175 = arith.mulf %25, %174 : vector<8x32xf32>
    %176 = vector.broadcast %173 : vector<1x32xf32> to vector<8x32xf32>
    %177 = arith.mulf %27, %176 : vector<8x32xf32>
    %178 = vector.broadcast %173 : vector<1x32xf32> to vector<8x32xf32>
    %179 = arith.mulf %29, %178 : vector<8x32xf32>
    %cst_50 = arith.constant dense<0.000000e+00> : vector<8x8xf32>
    %180 = tpu.matmul %175, %177, %cst_50 {dimension_numbers = #tpu.dot_dimension_numbers<[1], [1], [0], [0], [0, 0, 1, 0], [], []>} : vector<8x32xf32>, vector<8x32xf32>, vector<8x8xf32> -> vector<8x8xf32>
    %cst_51 = arith.constant 5.000000e-01 : f32
    %181 = vector.broadcast %cst_51 : f32 to vector<8x8xf32>
    %182 = arith.mulf %180, %181 : vector<8x8xf32>
    %cst_52 = arith.constant dense<0xFF800000> : vector<8xf32>
    %183 = vector.multi_reduction <maximumf>, %182, %cst_52 [1] : vector<8x8xf32> to vector<8xf32>
    %184 = vector.shape_cast %183 : vector<8xf32> to vector<8x1xf32>
    %185 = vector.broadcast %184 : vector<8x1xf32> to vector<8x8xf32>
    %186 = arith.subf %182, %185 : vector<8x8xf32>
    %187 = math.exp %186 : vector<8x8xf32>
    %cst_53 = arith.constant dense<0.000000e+00> : vector<8xf32>
    %188 = vector.multi_reduction <add>, %187, %cst_53 [1] : vector<8x8xf32> to vector<8xf32>
    %189 = vector.shape_cast %188 : vector<8xf32> to vector<8x1xf32>
    %190 = vector.broadcast %189 : vector<8x1xf32> to vector<8x8xf32>
    %191 = arith.divf %187, %190 : vector<8x8xf32>
    %cst_54 = arith.constant dense<0.000000e+00> : vector<8x32xf32>
    %192 = tpu.matmul %191, %179, %cst_54 {dimension_numbers = #tpu.dot_dimension_numbers<[1], [0], [0], [1], [0, 0, 1, 1], [], []>} : vector<8x8xf32>, vector<8x32xf32>, vector<8x32xf32> -> vector<8x32xf32>
    %193 = arith.addf %166, %192 : vector<8x32xf32>
    %c24_i32_55 = arith.constant 24 : i32
    %194 = vector.broadcast %c24_i32_55 : i32 to vector<1x32xi32>
    %195 = arith.cmpi sge, %30, %194 : vector<1x32xi32>
    %c28_i32 = arith.constant 28 : i32
    %196 = vector.broadcast %c28_i32 : i32 to vector<1x32xi32>
    %197 = arith.cmpi slt, %30, %196 : vector<1x32xi32>
    %198 = arith.andi %195, %197 : vector<1x32xi1>
    %199 = arith.extui %198 : vector<1x32xi1> to vector<1x32xi32>
    %200 = arith.sitofp %199 : vector<1x32xi32> to vector<1x32xf32>
    %201 = vector.broadcast %200 : vector<1x32xf32> to vector<8x32xf32>
    %202 = arith.mulf %25, %201 : vector<8x32xf32>
    %203 = vector.broadcast %200 : vector<1x32xf32> to vector<8x32xf32>
    %204 = arith.mulf %27, %203 : vector<8x32xf32>
    %205 = vector.broadcast %200 : vector<1x32xf32> to vector<8x32xf32>
    %206 = arith.mulf %29, %205 : vector<8x32xf32>
    %cst_56 = arith.constant dense<0.000000e+00> : vector<8x8xf32>
    %207 = tpu.matmul %202, %204, %cst_56 {dimension_numbers = #tpu.dot_dimension_numbers<[1], [1], [0], [0], [0, 0, 1, 0], [], []>} : vector<8x32xf32>, vector<8x32xf32>, vector<8x8xf32> -> vector<8x8xf32>
    %cst_57 = arith.constant 5.000000e-01 : f32
    %208 = vector.broadcast %cst_57 : f32 to vector<8x8xf32>
    %209 = arith.mulf %207, %208 : vector<8x8xf32>
    %cst_58 = arith.constant dense<0xFF800000> : vector<8xf32>
    %210 = vector.multi_reduction <maximumf>, %209, %cst_58 [1] : vector<8x8xf32> to vector<8xf32>
    %211 = vector.shape_cast %210 : vector<8xf32> to vector<8x1xf32>
    %212 = vector.broadcast %211 : vector<8x1xf32> to vector<8x8xf32>
    %213 = arith.subf %209, %212 : vector<8x8xf32>
    %214 = math.exp %213 : vector<8x8xf32>
    %cst_59 = arith.constant dense<0.000000e+00> : vector<8xf32>
    %215 = vector.multi_reduction <add>, %214, %cst_59 [1] : vector<8x8xf32> to vector<8xf32>
    %216 = vector.shape_cast %215 : vector<8xf32> to vector<8x1xf32>
    %217 = vector.broadcast %216 : vector<8x1xf32> to vector<8x8xf32>
    %218 = arith.divf %214, %217 : vector<8x8xf32>
    %cst_60 = arith.constant dense<0.000000e+00> : vector<8x32xf32>
    %219 = tpu.matmul %218, %206, %cst_60 {dimension_numbers = #tpu.dot_dimension_numbers<[1], [0], [0], [1], [0, 0, 1, 1], [], []>} : vector<8x8xf32>, vector<8x32xf32>, vector<8x32xf32> -> vector<8x32xf32>
    %220 = arith.addf %193, %219 : vector<8x32xf32>
    %c28_i32_61 = arith.constant 28 : i32
    %221 = vector.broadcast %c28_i32_61 : i32 to vector<1x32xi32>
    %222 = arith.cmpi sge, %30, %221 : vector<1x32xi32>
    %c32_i32 = arith.constant 32 : i32
    %223 = vector.broadcast %c32_i32 : i32 to vector<1x32xi32>
    %224 = arith.cmpi slt, %30, %223 : vector<1x32xi32>
    %225 = arith.andi %222, %224 : vector<1x32xi1>
    %226 = arith.extui %225 : vector<1x32xi1> to vector<1x32xi32>
    %227 = arith.sitofp %226 : vector<1x32xi32> to vector<1x32xf32>
    %228 = vector.broadcast %227 : vector<1x32xf32> to vector<8x32xf32>
    %229 = arith.mulf %25, %228 : vector<8x32xf32>
    %230 = vector.broadcast %227 : vector<1x32xf32> to vector<8x32xf32>
    %231 = arith.mulf %27, %230 : vector<8x32xf32>
    %232 = vector.broadcast %227 : vector<1x32xf32> to vector<8x32xf32>
    %233 = arith.mulf %29, %232 : vector<8x32xf32>
    %cst_62 = arith.constant dense<0.000000e+00> : vector<8x8xf32>
    %234 = tpu.matmul %229, %231, %cst_62 {dimension_numbers = #tpu.dot_dimension_numbers<[1], [1], [0], [0], [0, 0, 1, 0], [], []>} : vector<8x32xf32>, vector<8x32xf32>, vector<8x8xf32> -> vector<8x8xf32>
    %cst_63 = arith.constant 5.000000e-01 : f32
    %235 = vector.broadcast %cst_63 : f32 to vector<8x8xf32>
    %236 = arith.mulf %234, %235 : vector<8x8xf32>
    %cst_64 = arith.constant dense<0xFF800000> : vector<8xf32>
    %237 = vector.multi_reduction <maximumf>, %236, %cst_64 [1] : vector<8x8xf32> to vector<8xf32>
    %238 = vector.shape_cast %237 : vector<8xf32> to vector<8x1xf32>
    %239 = vector.broadcast %238 : vector<8x1xf32> to vector<8x8xf32>
    %240 = arith.subf %236, %239 : vector<8x8xf32>
    %241 = math.exp %240 : vector<8x8xf32>
    %cst_65 = arith.constant dense<0.000000e+00> : vector<8xf32>
    %242 = vector.multi_reduction <add>, %241, %cst_65 [1] : vector<8x8xf32> to vector<8xf32>
    %243 = vector.shape_cast %242 : vector<8xf32> to vector<8x1xf32>
    %244 = vector.broadcast %243 : vector<8x1xf32> to vector<8x8xf32>
    %245 = arith.divf %241, %244 : vector<8x8xf32>
    %cst_66 = arith.constant dense<0.000000e+00> : vector<8x32xf32>
    %246 = tpu.matmul %245, %233, %cst_66 {dimension_numbers = #tpu.dot_dimension_numbers<[1], [0], [0], [1], [0, 0, 1, 1], [], []>} : vector<8x8xf32>, vector<8x32xf32>, vector<8x32xf32> -> vector<8x32xf32>
    %247 = arith.addf %220, %246 : vector<8x32xf32>
    %c0_67 = arith.constant 0 : index
    %c0_68 = arith.constant 0 : index
    %248 = vector.load %arg7[%c0_67, %c0_68] : memref<32x32xf32, #tpu.memory_space<vmem>>, vector<32x32xf32>
    %cst_69 = arith.constant dense<0.000000e+00> : vector<8x32xf32>
    %249 = tpu.matmul %247, %248, %cst_69 {dimension_numbers = #tpu.dot_dimension_numbers<[1], [0], [0], [1], [0, 0, 1, 1], [], []>} : vector<8x32xf32>, vector<32x32xf32>, vector<8x32xf32> -> vector<8x32xf32>
    %c0_70 = arith.constant 0 : index
    %c0_71 = arith.constant 0 : index
    %250 = vector.load %arg8[%c0_70, %c0_71] : memref<1x32xf32, #tpu.memory_space<vmem>>, vector<1x32xf32>
    %251 = vector.broadcast %250 : vector<1x32xf32> to vector<8x32xf32>
    %252 = arith.addf %249, %251 : vector<8x32xf32>
    %253 = arith.addf %1, %252 : vector<8x32xf32>
    %c0_72 = arith.constant 0 : index
    %c0_73 = arith.constant 0 : index
    %c0_74 = arith.constant 0 : index
    %254 = vector.load %arg9[%c0_72, %c0_73, %c0_74] : memref<1x8x32xf32, #tpu.memory_space<vmem>>, vector<1x8x32xf32>
    %255 = vector.shape_cast %254 : vector<1x8x32xf32> to vector<8x32xf32>
    %256 = vector.shape_cast %253 : vector<8x32xf32> to vector<1x8x32xf32>
    tpu.vector_store %arg9[%c0_72, %c0_73, %c0_74], %256 {strides = array<i32>} : memref<1x8x32xf32, #tpu.memory_space<vmem>>, vector<1x8x32xf32>,
    return
  }
  func.func @transform_0(%arg0: i32) -> (i32, i32, i32) {
    %c0_i32 = arith.constant 0 : i32
    %c0_i32_0 = arith.constant 0 : i32
    %c0_i32_1 = arith.constant 0 : i32
    return %arg0, %c0_i32, %c0_i32_0 : i32, i32, i32
  }
  func.func @transform_1(%arg0: i32) -> (i32, i32) {
    %c0_i32 = arith.constant 0 : i32
    %c0_i32_0 = arith.constant 0 : i32
    %c0_i32_1 = arith.constant 0 : i32
    return %c0_i32, %c0_i32_0 : i32, i32
  }
  func.func @transform_2(%arg0: i32) -> (i32, i32) {
    %c0_i32 = arith.constant 0 : i32
    %c0_i32_0 = arith.constant 0 : i32
    %c0_i32_1 = arith.constant 0 : i32
    return %c0_i32, %c0_i32_0 : i32, i32
  }
  func.func @transform_3(%arg0: i32) -> (i32, i32) {
    %c0_i32 = arith.constant 0 : i32
    %c0_i32_0 = arith.constant 0 : i32
    %c0_i32_1 = arith.constant 0 : i32
    return %c0_i32, %c0_i32_0 : i32, i32
  }
  func.func @transform_4(%arg0: i32) -> (i32, i32) {
    %c0_i32 = arith.constant 0 : i32
    %c0_i32_0 = arith.constant 0 : i32
    %c0_i32_1 = arith.constant 0 : i32
    return %c0_i32, %c0_i32_0 : i32, i32
  }
  func.func @transform_5(%arg0: i32) -> (i32, i32) {
    %c0_i32 = arith.constant 0 : i32
    %c0_i32_0 = arith.constant 0 : i32
    %c0_i32_1 = arith.constant 0 : i32
    return %c0_i32, %c0_i32_0 : i32, i32
  }
  func.func @transform_6(%arg0: i32) -> (i32, i32) {
    %c0_i32 = arith.constant 0 : i32
    %c0_i32_0 = arith.constant 0 : i32
    %c0_i32_1 = arith.constant 0 : i32
    return %c0_i32, %c0_i32_0 : i32, i32
  }
  func.func @transform_7(%arg0: i32) -> (i32, i32) {
    %c0_i32 = arith.constant 0 : i32
    %c0_i32_0 = arith.constant 0 : i32
    %c0_i32_1 = arith.constant 0 : i32
    return %c0_i32, %c0_i32_0 : i32, i32
  }
  func.func @transform_8(%arg0: i32) -> (i32, i32, i32) {
    %c0_i32 = arith.constant 0 : i32
    %c0_i32_0 = arith.constant 0 : i32
    %c0_i32_1 = arith.constant 0 : i32
    return %arg0, %c0_i32, %c0_i32_0 : i32, i32, i32
  }
}

</mosaic_0001>

<bundles_post_ra>
// kernel: tpu_custom_call.1
= control target key start
LH: loop header
LB: loop body
LE: loop exit
PB: predicated region body
PF: predicated region fallthrough
CT: control target
= control target key end

     0   :  { %s3234_s0 = inlined_call_operand.hbm [shape: f32[2,8,32], index: 0, kind: input, shape index: {}]   ;;  %s3235_s1 = inlined_call_operand.vmem [shape: f32[1,32], index: 1, kind: input, shape index: {}]   ;;  %s3236_s2 = inlined_call_operand.vmem [shape: f32[1,32], index: 2, kind: input, shape index: {}]   ;;  %s3237_s3 = inlined_call_operand.hbm [shape: f32[32,32], index: 3, kind: input, shape index: {}]   ;;  %s3238_s4 = inlined_call_operand.hbm [shape: f32[32,32], index: 4, kind: input, shape index: {}]   ;;  %s3239_s5 = inlined_call_operand.hbm [shape: f32[32,32], index: 5, kind: input, shape index: {}]   ;;  %s3240_s6 = inlined_call_operand.hbm [shape: f32[32,32], index: 6, kind: input, shape index: {}]   ;;  %s3241_s7 = inlined_call_operand.vmem [shape: f32[1,32], index: 7, kind: input, shape index: {}]   ;;  %s3242_s8 = inlined_call_operand.hbm [shape: f32[2,8,32], index: 8, kind: output, shape index: {}]  }
   0x1   :  { %3247 = sst [smem:[#allocation16_spill]] %s3237_s3 }
   0x2   :  { %3248 = sst [smem:[#allocation17_spill]] %s3238_s4 }
   0x3   :  { %3249 = sst [smem:[#allocation18_spill]] %s3239_s5 }
   0x4   :  { %13 = vsyncpa [#allocation3], 0 }
   0x5   :  { %15 = vsyncpa [#allocation3 + $0x1], 0 }
   0x6   :  { %16 = vsyncpa [#allocation6], 0 }
   0x7   :  { %17 = vsyncpa [#allocation9], 0 }
   0x8   :  { %18 = vsyncpa [#allocation4], 0 }
   0x9   :  { %20 = vsyncpa [#allocation4 + $0x1], 0  ;;  %s2826_s27 = smov 0   ;;  %s2828_s28 = smov 0  }
   0xa   :  { %s2830_s29 = smov 0   ;;  %s2832_s30 = smov 0  }
   0xb LB: > { %s2771_s9 = smov [#allocation5]   ;;  %s2847_s11 = sadd.s32 4294967295, %s2769_s30   ;;  %s2769_s30 = sphi %s2832_s30, %s3274_s30   ;;  %s2765_s29 = sphi %s2830_s29, %s3273_s29   ;;  %s2761_s28 = sphi %s2828_s28, %s3272_s28   ;;  %s2757_s27 = sphi %s2826_s27, %s3271_s27  }
   0xc   : > { %s248_s10 = sshll.u32 %s2771_s9, 4  ;;  %p2206_p0 = scmp.ge.s32.totalorder %s2769_s30, 1  ;;  %s249_s10 = int_to_ptr.vmem [resolvable:$true] %s248_s10 }
   0xd   : > { %p3243_p1 = scmp.eq.s32.totalorder %s2847_s11, 0  ;;  %p230_p2 = scmp.lt.s32.totalorder %s2769_s30, 3 }
   0xe   : > { %s2772_s13 = smov [#allocation8]   ;;  %s2773_s16 = smov [#allocation7]  }
   0xf   : > { %p2852_p3 = pnand %p2206_p0, %p230_p2  ;;  %s274_s14 = sshll.u32 %s2772_s13, 4  ;;  %s2865_s14 = int_to_ptr.vmem [resolvable:$true] %s274_s14 }
  0x10   : > { %s261_s17 = sshll.u32 %s2773_s16, 4  ;;  %s2576_s18 = scalar_lea.vmem %s249_s10, 512  ;;  %s2867_s17 = int_to_ptr.vmem [resolvable:$true] %s261_s17 }
  0x11   : > { %s3250_s12 = scalar_select %p2852_p3, 1, 0 }
  0x12   : > { %p2460_p5 = pneg %p2852_p3  ;;  %p2577_p8 = scmp.ne.s32.totalorder %s249_s10, %s2576_s18 }
  0x13   : > { %p2584_p11 = scmp.lt.s32.totalorder %s249_s10, %s249_s10  ;;  %p2585_p12 = scmp.lt.s32.totalorder %s2576_s18, %s2576_s18 }
  0x14   : > { %p2861_p6 = pnand %p2460_p5, %p3243_p1 }
  0x15   : > { %p2586_p13 = por %p2585_p12, %p2584_p11 }
  0x16   : > { %p2567_p7 = pneg %p2861_p6 }
  0x18   : > { %p2579_p9 = pnand %p2577_p8, %p2567_p7 }
  0x1a   : > { %p2580_p10 = pneg %p2579_p9 }
  0x1c   : > { %p2587_p0 = pnand %p2586_p13, %p2580_p10 }
  0x1e   : > { %2590 = shalt.err (!%p2587_p0)
}
  0x1f   : > { %s2774_s19 = smov 128   ;;  %s2775_s20 = smov 8  }
  0x20   : > { %s3252_s3 = sld [smem:[#allocation16_spill]]  ;;  %s2602_s23 = scalar_lea.vmem %s2865_s14, 512 }
  0x21   : > { %p2603_p2 = scmp.ne.s32.totalorder %s2865_s14, %s2602_s23  ;;  %p2610_p9 = scmp.lt.s32.totalorder %s2865_s14, %s2865_s14 }
  0x22   : > { %p2611_p10 = scmp.lt.s32.totalorder %s2602_s23, %s2602_s23 }
  0x23   : > { %p2605_p5 = pnand %p2603_p2, %p2567_p7 }
  0x24   : > { %p2612_p11 = por %p2611_p10, %p2610_p9 }
  0x25   : > { %p2606_p8 = pneg %p2605_p5 }
  0x26   : > { %2463 = dma.hbm_to_vmem [thread:$0]  (!%p2861_p6), %s3252_s3, 512, %s249_s10, [#allocation6], %s2774_s19, %s2774_s19, %s2775_s20  }
  0x27   : > { %p2613_p12 = pnand %p2612_p11, %p2606_p8 }
  0x29   : > { %2616 = shalt.err (!%p2613_p12)
}
  0x2a   : > { %s3253_s5 = sld [smem:[#allocation18_spill]]  ;;  %s2628_s26 = scalar_lea.vmem %s2867_s17, 512 }
  0x2b   : > { %p2629_p13 = scmp.ne.s32.totalorder %s2867_s17, %s2628_s26  ;;  %p2636_p5 = scmp.lt.s32.totalorder %s2867_s17, %s2867_s17 }
  0x2c   : > { %p2637_p8 = scmp.lt.s32.totalorder %s2628_s26, %s2628_s26 }
  0x2d   : > { %p2631_p0 = pnand %p2629_p13, %p2567_p7 }
  0x2e   : > { %p2638_p9 = por %p2637_p8, %p2636_p5 }
  0x2f   : > { %p2632_p2 = pneg %p2631_p0 }
  0x30   : > { %2469 = dma.hbm_to_vmem [thread:$0]  (!%p2861_p6), %s3253_s5, 512, %s2865_s14, [#allocation9], %s2774_s19, %s2774_s19, %s2775_s20  }
  0x31   : > { %p2639_p10 = pnand %p2638_p9, %p2632_p2 }
  0x33   : > { %2642 = shalt.err (!%p2639_p10)
}
  0x34   : > { %s3254_s4 = sld [smem:[#allocation17_spill]]  ;;  %s2776_s13 = smov [#allocation10]  }
  0x35   : > { %s287_s14 = sshll.u32 %s2776_s13, 4  ;;  %s288_s14 = int_to_ptr.vmem [resolvable:$true] %s287_s14 }
  0x36   : > { %s2654_s16 = scalar_lea.vmem %s288_s14, 512  ;;  %p2662_p0 = scmp.lt.s32.totalorder %s288_s14, %s288_s14 }
  0x37   : > { %p2655_p11 = scmp.ne.s32.totalorder %s288_s14, %s2654_s16  ;;  %p2663_p2 = scmp.lt.s32.totalorder %s2654_s16, %s2654_s16 }
  0x39   : > { %p2657_p12 = pnand %p2655_p11, %p2567_p7  ;;  %p2664_p5 = por %p2663_p2, %p2662_p0 }
  0x3a   : > { %2466 = dma.hbm_to_vmem [thread:$0]  (!%p2861_p6), %s3254_s4, 512, %s2867_s17, [#allocation6], %s2774_s19, %s2774_s19, %s2775_s20  }
  0x3b   : > { %p2658_p13 = pneg %p2657_p12 }
  0x3d   : > { %p2665_p8 = pnand %p2664_p5, %p2658_p13 }
  0x3f   : > { %2668 = shalt.err (!%p2665_p8)
}
  0x40   : > { %2472 = dma.hbm_to_vmem [thread:$0]  (!%p2861_p6), %s3240_s6, 512, %s288_s14, [#allocation9], %s2774_s19, %s2774_s19, %s2775_s20  }
  0x41   : > { %s2205_s15 = sadd.s32 4294967294, %s2769_s30   ;;  %s2927_s21 = sadd.s32 1, %s2769_s30  }
  0x42   : > { %s30_s22 = ssub.s32 %s2769_s30, %s2927_s21  ;;  %s33_s23 = sadd.s32 1, %s2765_s29 }
  0x43   : > { %p31_p7 = scmp.eq.s32.totalorder %s30_s22, 0  ;;  %p40_p9 = scmp.ne.s32.totalorder %s2765_s29, %s2761_s28 }
  0x44   : > { %p41_p10 = scmp.eq.s32.totalorder %s2769_s30, 0  ;;  %p46_p11 = scmp.ne.s32.totalorder %s2761_s28, %s2757_s27 }
  0x45   : > { %s2938_s24 = scalar_select %p31_p7, %s2765_s29, %s33_s23  }
  0x46   : > { %p2940_p12 = por %p41_p10, %p40_p9  ;;  %p2946_p6 = por %p3243_p1, %p46_p11 }
  0x47   : > { %p217_p13 = scmp.eq.s32.totalorder %s2847_s11, 1  ;;  %p223_p0 = scmp.eq.s32.totalorder %s2205_s15, 1 }
  0x48   : > { %s3256_s19 = scalar_select %p2946_p6, 1, 0 }
  0x49   : > { %p2485_p2 = scmp.lt.s32.totalorder %s2769_s30, 2  ;;  %s304_s20 = sand.u32 1, %s2765_s29  }
  0x4a   : > { %p2953_p5 = por %p217_p13, %p40_p9  ;;  %p2957_p8 = por %p223_p0, %p46_p11 }
  0x4b   : > { %s2212_s10 = sshll.u32 %s304_s20, 3  ;;  %s2213_s13 = sshll.u32 %s2769_s30, 7 }
  0x4c   : > { %s3257_s26 = scalar_select %p2953_p5, 1, 0 }
  0x4d   : > { %s3258_s9 = scalar_select %p2957_p8, 1, 0 }
  0x4e   : > { %s2965_s17 = scalar_lea.hbm %s3234_s0, %s2213_s13  ;;  %s308_s18 = scalar_lea.vmem [#allocation2], %s2212_s10 }
  0x4f   : > { %s315_s15 = sshll.u32 %s308_s18, 4  ;;  %p2969_p7 = pnand %p2485_p2, %p2940_p12  ;;  %s316_s15 = int_to_ptr.vmem [resolvable:$true] %s315_s15 }
  0x50   : > { %s305_s23 = scalar_lea.sflag [#allocation3], %s304_s20  ;;  %s2669_s3 = scalar_lea.hbm %s2965_s17, 128 }
  0x51   : > { %p2670_p9 = scmp.ne.s32.totalorder %s2965_s17, %s2669_s3  ;;  %p2671_p10 = pneg %p2969_p7 }
  0x52   : > { %s2674_s16 = scalar_lea.hbm %s3234_s0, 256  ;;  %p2675_p0 = scmp.lt.s32.totalorder %s2965_s17, %s3234_s0 }
  0x53   : > { %p2672_p11 = pnand %p2671_p10, %p2670_p9  ;;  %p2676_p12 = scmp.lt.s32.totalorder %s2674_s16, %s2669_s3 }
  0x55   : > { %p2673_p13 = pneg %p2672_p11  ;;  %p2677_p2 = por %p2676_p12, %p2675_p0 }
  0x57   : > { %p2678_p4 = pnand %p2677_p2, %p2673_p13 }
  0x59   : > { %2681 = shalt.err (!%p2678_p4)
}
  0x5a   : > { %s2682_s25 = scalar_lea.vmem %s316_s15, 128  ;;  %s2777_s20 = smov [#allocation2]  }
  0x5b   : > { %p2683_p1 = scmp.ne.s32.totalorder %s316_s15, %s2682_s25  ;;  %s2687_s4 = sshll.u32 %s2777_s20, 4  ;;  %s2688_s4 = int_to_ptr.vmem [resolvable:$false] %s2687_s4 }
  0x5c   : > { %s2689_s5 = scalar_lea.vmem %s2688_s4, 256  ;;  %p2690_p9 = scmp.lt.s32.totalorder %s316_s15, %s2688_s4 }
  0x5d   : > { %p2685_p8 = pnand %p2683_p1, %p2671_p10  ;;  %p2691_p11 = scmp.lt.s32.totalorder %s2689_s5, %s2682_s25 }
  0x5f   : > { %p2686_p5 = pneg %p2685_p8  ;;  %p2692_p6 = por %p2691_p11, %p2690_p9 }
  0x61   : > { %p2693_p3 = pnand %p2692_p6, %p2686_p5 }
  0x63   : > { %2696 = shalt.err (!%p2693_p3)
}
  0x64   : > { %2476 = dma.hbm_to_vmem [thread:$0]  (!%p2969_p7), %s2965_s17, 128, %s316_s15, %s305_s23  }
  0x65   : > { %p3260_p13 = scmp.ne.s32.totalorder %s3250_s12, 0 }
  0x66   : > { %s2990_s3 = sand.u32 (!%p3260_p13), 1, %s2761_s28   ;;  %p3261_p1 = scmp.ne.s32.totalorder (!%p3260_p13), %s3256_s19, 0 }
  0x67   : > { %324 = sbr.rel (%p3260_p13) target bundleno = 1566 (0x61e), region = 52  ;;  %s2215_s13 = sshll.u32 (!%p3260_p13), %s2990_s3, 3 }
  0x68   : > { %s327_s4 = scalar_lea.sflag (!%p3260_p13), [#allocation3], %s2990_s3  ;;  %s330_s5 = scalar_lea.vmem (!%p3260_p13), [#allocation2], %s2215_s13 }
  0x6c   : > { %2740 = dma.done.wait (%p3261_p1), %s327_s4, 128  }
  0x6d   : > { %2742 = vsyncadd (%p3261_p1), %s327_s4, 4294967168  ;;  %p3262_p3 = scmp.eq.s32.totalorder %s2847_s11, 0 }
  0x6f   : > { %2744 = dma.done.wait (%p3262_p3), [#allocation6], 1024   ;;  %p3263_p4 = pmov %p3262_p3 }
  0x70   : > { %p3264_p6 = pmov %p3262_p3 }
  0x71   : > { %2746 = vsyncadd (%p3263_p4), [#allocation6], 4294966272 }
  0x72   : > { %2748 = dma.done.wait (%p3264_p6), [#allocation9], 1024   ;;  %p3265_p5 = pmov %p3262_p3 }
  0x73   : > { %vm382_vm0 = vcmask 261120   ;;  %v3008_v0 = vld [vmem:[%s330_s5] sm:$0xff]  ;;  %v2778_v9 = vmov 0.0   ;;  %v412_v12 = vld [vmem:[#allocation5 + $0x8] sm:$0xff]  ;;  %v411_v14 = vld [vmem:[#allocation5] sm:$0xff]  ;;  %vm2779_vm1 = vmmov 0   ;;  %v636_v29 = vlaneseq }
  0x74   : > { %2750 = vsyncadd (%p3265_p5), [#allocation9], 4294966272  ;;  %v383_v1 = vsel %vm382_vm0, %v3008_v0, 0.0  ;;  %v414_v7 = vld [vmem:[#allocation5 + $0x18] sm:$0xff]  ;;  %2316 = vmatprep.subr.mxu0 %v2778_v9  ;;  %2327 = vmatprep.subr.mxu1 %v2778_v9  ;;  %v413_v10 = vld [vmem:[#allocation5 + $0x10] sm:$0xff]  ;;  %s2261_s14 = sshll.u32 %s2847_s11, 7 }
  0x75   : > { %384 = vadd.xlane.f32.xlu0 %v383_v1  ;;  %v491_v8 = vld [vmem:[#allocation7 + $0x18] sm:$0xff]  ;;  %v490_v11 = vld [vmem:[#allocation7 + $0x10] sm:$0xff]  ;;  %2317 = vmatpush3.msra.mxu0 %v414_v7  ;;  %v489_v13 = vld [vmem:[#allocation7 + $0x8] sm:$0xff]  ;;  %v637_v30 = vand.u32 127, %v636_v29  ;;  %s378_s16 = scalar_lea.vmem [#allocation11], %s2215_s13  ;;  %s2095_s20 = scalar_lea.hbm %s3242_s8, %s2261_s14 }
  0x76   : > { %2328 = vmatpush3.msra.mxu1 %v491_v8  ;;  %2318 = vmatprep.subr.mxu0 %v2778_v9  ;;  %v488_v15 = vld [vmem:[#allocation7] sm:$0xff]  ;;  %v2221_v20 = vld [vmem:[%s3235_s1] ss:$0 sm:$0xff]  ;;  %v565_v25 = vld [vmem:[#allocation8 + $0x18] sm:$0xff]  ;;  %s2097_s10 = sshll.u32 %s378_s16, 4  ;;  %s2084_s4 = scalar_lea.sflag [#allocation4], %s2990_s3  ;;  %s2098_s10 = int_to_ptr.vmem [resolvable:$true] %s2097_s10 }
  0x77   : > { %2329 = vmatprep.subr.mxu1 %v2778_v9  ;;  %2319 = vmatpush3.msra.mxu0 %v413_v10  ;;  %v2222_v22 = vld [vmem:[%s3236_s2] ss:$0 sm:$0xff]  ;;  %v563_v27 = vld [vmem:[#allocation8 + $0x8] sm:$0xff]  ;;  %v562_v28 = vld [vmem:[#allocation8] sm:$0xff]  ;;  %vm977_vm2 = vcmp.ge.s32.totalorder %v637_v30, 8  ;;  %vm978_vm3 = vcmp.lt.s32.totalorder %v637_v30, 12 }
  0x78   : > { %2330 = vmatpush3.msra.mxu1 %v490_v11  ;;  %2320 = vmatprep.subr.mxu0 %v2778_v9  ;;  %v564_v26 = vld [vmem:[#allocation8 + $0x10] sm:$0xff]  ;;  %vm639_vm4 = vcmp.lt.s32.totalorder %v637_v30, 4  ;;  %vm979_vm5 = vmand %vm977_vm2, %vm978_vm3  ;;  %vm735_vm6 = vcmp.ge.s32.totalorder %v637_v30, 4  ;;  %vm736_vm7 = vcmp.lt.s32.totalorder %v637_v30, 8  ;;  %vm1147_vm8 = vcmp.ge.s32.totalorder %v637_v30, 12  ;;  %s2697_s5 = scalar_lea.vmem %s2098_s10, 128 }
  0x79   : > { %2331 = vmatprep.subr.mxu1 %v2778_v9  ;;  %2321 = vmatpush3.msra.mxu0 %v412_v12  ;;  %vm1148_vm9 = vcmp.lt.s32.totalorder %v637_v30, 16  ;;  %v2226_v31 = vsel %vm639_vm4, 1.0, %v2778_v9  ;;  %v2234_v32 = vsel %vm979_vm5, 1.0, %v2778_v9  ;;  %vm737_vm10 = vmand %vm735_vm6, %vm736_vm7  ;;  %vm1317_vm12 = vcmp.ge.s32.totalorder %v637_v30, 16  ;;  %p2698_p8 = scmp.ne.s32.totalorder %s2098_s10, %s2697_s5  ;;  %p3268_p7 = scmp.ne.s32.totalorder %s3257_s26, 0 }
  0x7a   : > { %2332 = vmatpush3.msra.mxu1 %v489_v13  ;;  %2322 = vmatprep.subr.mxu0 %v2778_v9  ;;  %vm1149_vm11 = vmand %vm1147_vm8, %vm1148_vm9  ;;  %vm1318_vm13 = vcmp.lt.s32.totalorder %v637_v30, 20  ;;  %v2229_v39 = vsel %vm737_vm10, 1.0, %v2778_v9  ;;  %vm1487_vm15 = vcmp.ge.s32.totalorder %v637_v30, 20  ;;  %vm1488_vm2 = vcmp.lt.s32.totalorder %v637_v30, 24  ;;  %s2780_s11 = smov [#allocation11]  }
  0x7b   : > { %2333 = vmatprep.subr.mxu1 %v2778_v9  ;;  %2323 = vmatpush3.msra.mxu0 %v411_v14  ;;  %v2238_v40 = vsel %vm1149_vm11, 1.0, %v2778_v9  ;;  %vm1319_vm14 = vmand %vm1317_vm12, %vm1318_vm13  ;;  %vm1657_vm3 = vcmp.ge.s32.totalorder %v637_v30, 24  ;;  %vm1658_vm4 = vcmp.lt.s32.totalorder %v637_v30, 28  ;;  %vm1827_vm5 = vcmp.ge.s32.totalorder %v637_v30, 28  ;;  %p2699_p10 = pnand %p2698_p8, %p3268_p7  ;;  %s2701_s13 = sshll.u32 %s2780_s11, 4  ;;  %s2702_s13 = int_to_ptr.vmem [resolvable:$false] %s2701_s13 }
  0x7c   : > { %2324 = vmatprep.mubr.msk.f32.mxu0 %vm2779_vm1, %v2778_v9  ;;  %2334 = vmatpush3.msra.mxu1 %v488_v15  ;;  %vm1828_vm6 = vcmp.lt.s32.totalorder %v637_v30, 32  ;;  %v2242_v45 = vsel %vm1319_vm14, 1.0, %v2778_v9  ;;  %vm1489_vm7 = vmand %vm1487_vm15, %vm1488_vm2  ;;  %vm723_vm10 = vcmask 64512   ;;  %s2703_s12 = scalar_lea.vmem %s2702_s13, 256  ;;  %p2704_p12 = scmp.lt.s32.totalorder %s2098_s10, %s2702_s13 }
  0x7d   : > { %2335 = vmatprep.mubr.msk.f32.mxu1 %vm2779_vm1, %v2778_v9  ;;  %2338 = vmatprep.subr.mxu0 %v2778_v9  ;;  %vm1659_vm8 = vmand %vm1657_vm3, %vm1658_vm4  ;;  %v2246_v51 = vsel %vm1489_vm7, 1.0, %v2778_v9  ;;  %p2700_p0 = pneg %p2699_p10  ;;  %p2705_p2 = scmp.lt.s32.totalorder %s2703_s12, %s2697_s5 }
  0x7e   : > { %2349 = vmatprep.subr.mxu1 %v2778_v9  ;;  %vm3071_vm9 = vmand %vm1827_vm5, %vm1828_vm6  ;;  %v2250_v53 = vsel %vm1659_vm8, 1.0, %v2778_v9 }
  0x7f   : > { %v2254_v57 = vsel %vm3071_vm9, 1.0, %v2778_v9  ;;  %p2706_p9 = por %p2705_p2, %p2704_p12 }
  0x81   : > { %p2707_p11 = pnand %p2706_p9, %p2700_p0 }
  0xfe   : > { %v385_v2 = vpop.xlane.xlu0 %384 }
  0xff   : > { %v387_v3 = vmul.f32 0.03125, %v385_v2 }
 0x101   : > { %v388_v4 = vsub.f32 %v3008_v0, %v387_v3 }
 0x103   : > { %v389_v5 = vmul.f32 %v388_v4, %v388_v4 }
 0x105   : > { %v390_v6 = vsel %vm382_vm0, %v389_v5, 0.0 }
 0x106   : > { %391 = vadd.xlane.f32.xlu0 %v390_v6 }
 0x18f   : > { %v392_v16 = vpop.xlane.xlu0 %391 }
 0x190   : > { %v393_v17 = vmul.f32 0.03125, %v392_v16 }
 0x192   : > { %v394_v18 = vadd.f32 1e-05, %v393_v17 }
 0x194   : > { %2531 = vrsqrt.f32 %v394_v18 }
 0x1a1   : > { %v2532_v19 = vpop.eup %2531 }
 0x1a2   : > { %v396_v21 = vmul.f32 %v2532_v19, %v388_v4 }
 0x1a4   : > { %v403_v23 = vmul.f32 %v2221_v20, %v396_v21 }
 0x1a6   : > { %v410_v24 = vadd.f32 %v2222_v22, %v403_v23 }
 0x1a8   : > { %2325 = vmatmul.mubr.msk.f32.vlgmr.msra.gmra.mxu0 %vm382_vm0, %v410_v24  ;;  %2336 = vmatmul.mubr.msk.f32.vlgmr.msra.gmra.mxu1 %vm382_vm0, %v410_v24 }
 0x1a9   : > { %2339 = vmatpush3.msra.mxu0 %v565_v25  ;;  %2346 = vmatprep.mubr.msk.f32.mxu0 %vm2779_vm1, %v2778_v9 }
 0x1aa   : > { %2340 = vmatprep.subr.mxu0 %v2778_v9  ;;  %2351 = vmatprep.mubr.msk.f32.mxu1 %vm2779_vm1, %v2778_v9 }
 0x1ab   : > { %2341 = vmatpush3.msra.mxu0 %v564_v26 }
 0x1ac   : > { %2342 = vmatprep.subr.mxu0 %v2778_v9 }
 0x1ad   : > { %2343 = vmatpush3.msra.mxu0 %v563_v27 }
 0x1ae   : > { %2344 = vmatprep.subr.mxu0 %v2778_v9 }
 0x1af   : > { %2345 = vmatpush3.msra.mxu0 %v562_v28 }
 0x1b0   : > { %2347 = vmatmul.mubr.msk.f32.vlgmr.msra.gmra.mxu0 %vm382_vm0, %v410_v24  ;;  %2369 = vmatprep.subr.mxu0 %v2778_v9 }
 0x1b1   : > { %2371 = vmatprep.mubr.msk.f32.mxu0 %vm2779_vm1, %v2778_v9 }
 0x268   : > { %v3049_v33 = vpop.f32.mrf.mxu0  ;;  %v3051_v34 = vpop.f32.mrf.mxu1 }
 0x269   : > { %v644_v35 = vmul.f32 %v2226_v31, %v3051_v34  ;;  %v983_v36 = vmul.f32 %v2234_v32, %v3051_v34  ;;  %v643_v41 = vmul.f32 %v2226_v31, %v3049_v33  ;;  %v982_v42 = vmul.f32 %v2234_v32, %v3049_v33 }
 0x26a   : > { %v2326_v37 = vpop.f32.mrf.mxu0  ;;  %v2337_v38 = vpop.f32.mrf.mxu1  ;;  %v741_v43 = vmul.f32 %v2229_v39, %v3051_v34  ;;  %v1153_v44 = vmul.f32 %v2238_v40, %v3051_v34  ;;  %v740_v48 = vmul.f32 %v2229_v39, %v3049_v33  ;;  %v1152_v49 = vmul.f32 %v2238_v40, %v3049_v33 }
 0x26b   : > { %2350 = vmatpush3.xpose.msk.msra.mxu1 %vm382_vm0, %v644_v35  ;;  %2370 = vmatpush3.xpose.msk.msra.mxu0 %vm382_vm0, %v983_v36  ;;  %v1323_v50 = vmul.f32 %v2242_v45, %v3051_v34  ;;  %v1322_v63 = vmul.f32 %v2242_v45, %v3049_v33  ;;  %v1493_v1 = vmul.f32 %v2246_v51, %v3051_v34 }
 0x26c   : > { %2354 = vmatprep.subr.mxu1 %v2778_v9  ;;  %2379 = vmatprep.subr.mxu0 %v2778_v9  ;;  %v1492_v2 = vmul.f32 %v2246_v51, %v3049_v33  ;;  %v1663_v3 = vmul.f32 %v2250_v53, %v3051_v34  ;;  %v1662_v4 = vmul.f32 %v2250_v53, %v3049_v33 }
 0x26d   : > { %v1833_v5 = vmul.f32 %v2254_v57, %v3051_v34  ;;  %v1832_v6 = vmul.f32 %v2254_v57, %v3049_v33 }
 0x26e   : > { %2352 = vmatmul.mubr.msk.f32.vlgmr.msra.gmra.mxu1 %vm382_vm0, %v643_v41  ;;  %2372 = vmatmul.mubr.msk.f32.vlgmr.msra.gmra.mxu0 %vm382_vm0, %v982_v42 }
 0x26f   : > { %2355 = vmatpush3.xpose.msk.msra.mxu1 %vm382_vm0, %v741_v43  ;;  %2380 = vmatpush3.xpose.msk.msra.mxu0 %vm382_vm0, %v1153_v44 }
 0x270   : > { %v632_v47 = vpop.f32.mrf.mxu0  ;;  %2356 = vmatprep.mubr.msk.f32.mxu1 %vm2779_vm1, %v2778_v9  ;;  %2381 = vmatprep.mubr.msk.f32.mxu0 %vm2779_vm1, %v2778_v9 }
 0x271   : > { %2359 = vmatprep.subr.mxu1 %v2778_v9  ;;  %2389 = vmatprep.subr.mxu0 %v2778_v9  ;;  %v742_v52 = vmul.f32 %v2229_v39, %v632_v47  ;;  %v3086_v54 = vmul.f32 %v2226_v31, %v632_v47  ;;  %v3088_v55 = vmul.f32 %v2234_v32, %v632_v47 }
 0x272   : > { %v2348_v56 = vpop.f32.mrf.mxu0  ;;  %2357 = vmatmul.mubr.msk.f32.vlgmr.msra.gmra.mxu1 %vm382_vm0, %v740_v48  ;;  %2382 = vmatmul.mubr.msk.f32.vlgmr.msra.gmra.mxu0 %vm382_vm0, %v1152_v49  ;;  %v3095_v58 = vmul.f32 %v2238_v40, %v632_v47  ;;  %v3097_v59 = vmul.f32 %v2242_v45, %v632_v47  ;;  %v3099_v60 = vmul.f32 %v2246_v51, %v632_v47 }
 0x273   : > { %2360 = vmatpush3.msra.mxu1 %v742_v52  ;;  %2390 = vmatpush3.xpose.msk.msra.mxu0 %vm382_vm0, %v1323_v50  ;;  %v3102_v61 = vmul.f32 %v2250_v53, %v632_v47  ;;  %v3104_v62 = vmul.f32 %v2254_v57, %v632_v47 }
 0x274   : > { %2391 = vmatprep.mubr.msk.f32.mxu0 %vm2779_vm1, %v2778_v9  ;;  %2399 = vmatprep.subr.mxu0 %v2778_v9 }
 0x275   : > { %2361 = vmatprep.mubr.msk.f32.mxu1 %vm2779_vm1, %v2778_v9  ;;  %2364 = vmatprep.subr.mxu1 %v2778_v9 }
 0x276   : > { %2392 = vmatmul.mubr.msk.f32.vlgmr.msra.gmra.mxu0 %vm382_vm0, %v1322_v63 }
 0x277   : > { %2400 = vmatpush3.xpose.msk.msra.mxu0 %vm382_vm0, %v1493_v1  ;;  %2401 = vmatprep.mubr.msk.f32.mxu0 %vm2779_vm1, %v2778_v9 }
 0x278   : > { %2409 = vmatprep.subr.mxu0 %v2778_v9 }
 0x27a   : > { %2402 = vmatmul.mubr.msk.f32.vlgmr.msra.gmra.mxu0 %vm382_vm0, %v1492_v2 }
 0x27b   : > { %2410 = vmatpush3.xpose.msk.msra.mxu0 %vm382_vm0, %v1663_v3  ;;  %2411 = vmatprep.mubr.msk.f32.mxu0 %vm2779_vm1, %v2778_v9 }
 0x27c   : > { %2419 = vmatprep.subr.mxu0 %v2778_v9 }
 0x27e   : > { %2412 = vmatmul.mubr.msk.f32.vlgmr.msra.gmra.mxu0 %vm382_vm0, %v1662_v4 }
 0x27f   : > { %2420 = vmatpush3.xpose.msk.msra.mxu0 %vm382_vm0, %v1833_v5  ;;  %2421 = vmatprep.mubr.msk.f32.mxu0 %vm2779_vm1, %v2778_v9 }
 0x280   : > { %2429 = vmatprep.subr.mxu0 %v2778_v9 }
 0x282   : > { %2422 = vmatmul.mubr.msk.f32.vlgmr.msra.gmra.mxu0 %vm382_vm0, %v1832_v6 }
 0x283   : > { %2437 = vmatprep.mubr.msk.f32.mxu0 %vm2779_vm1, %v2778_v9 }
 0x32e   : > { %v718_v7 = vpop.f32.mrf.mxu1  ;;  %v1057_v8 = vpop.f32.mrf.mxu0 }
 0x32f   : > { %v1061_v10 = vmul.f32 0.5, %v1057_v8  ;;  %v722_v19 = vmul.f32 0.5, %v718_v7 }
 0x330   : > { %v2353_v11 = vpop.f32.mrf.mxu1  ;;  %v2373_v12 = vpop.f32.mrf.mxu0 }
 0x331   : > { %v1062_v13 = vsel %vm723_vm10, %v1061_v10, -inf  ;;  %v724_v25 = vsel %vm723_vm10, %v722_v19, -inf }
 0x332   : > { %v815_v14 = vpop.f32.mrf.mxu1  ;;  %1063 = vmax.xlane.f32.xlu0 %v1062_v13  ;;  %v1227_v15 = vpop.f32.mrf.mxu0 }
 0x333   : > { %v819_v16 = vmul.f32 0.5, %v815_v14  ;;  %v1231_v24 = vmul.f32 0.5, %v1227_v15 }
 0x334   : > { %v2358_v17 = vpop.f32.mrf.mxu1  ;;  %v2383_v18 = vpop.f32.mrf.mxu0 }
 0x335   : > { %v820_v20 = vsel %vm723_vm10, %v819_v16, -inf  ;;  %v1232_v30 = vsel %vm723_vm10, %v1231_v24, -inf }
 0x336   : > { %821 = vmax.xlane.f32.xlu1 %v820_v20  ;;  %v1397_v21 = vpop.f32.mrf.mxu0 }
 0x337   : > { %v1401_v22 = vmul.f32 0.5, %v1397_v21 }
 0x338   : > { %v2393_v23 = vpop.f32.mrf.mxu0 }
 0x339   : > { %v1402_v26 = vsel %vm723_vm10, %v1401_v22, -inf }
 0x33a   : > { %725 = vmax.xlane.f32.xlu1 %v724_v25  ;;  %1403 = vmax.xlane.f32.xlu0 %v1402_v26  ;;  %v1567_v27 = vpop.f32.mrf.mxu0 }
 0x33b   : > { %v1571_v29 = vmul.f32 0.5, %v1567_v27 }
 0x33c   : > { %v2403_v28 = vpop.f32.mrf.mxu0 }
 0x33d   : > { %v1572_v34 = vsel %vm723_vm10, %v1571_v29, -inf }
 0x33e   : > { %1233 = vmax.xlane.f32.xlu1 %v1232_v30  ;;  %v1737_v31 = vpop.f32.mrf.mxu0 }
 0x33f   : > { %v1741_v32 = vmul.f32 0.5, %v1737_v31 }
 0x340   : > { %v2413_v33 = vpop.f32.mrf.mxu0 }
 0x341   : > { %v1742_v35 = vsel %vm723_vm10, %v1741_v32, -inf }
 0x342   : > { %1573 = vmax.xlane.f32.xlu1 %v1572_v34  ;;  %1743 = vmax.xlane.f32.xlu0 %v1742_v35  ;;  %v1907_v36 = vpop.f32.mrf.mxu0 }
 0x343   : > { %v1911_v37 = vmul.f32 0.5, %v1907_v36 }
 0x344   : > { %v2423_v38 = vpop.f32.mrf.mxu0 }
 0x345   : > { %v1912_v39 = vsel %vm723_vm10, %v1911_v37, -inf }
 0x346   : > { %1913 = vmax.xlane.f32.xlu1 %v1912_v39 }
 0x3bb   : > { %v1064_v40 = vpop.xlane.xlu0 %1063 }
 0x3bc   : > { %v1065_v41 = vsub.f32 %v1061_v10, %v1064_v40 }
 0x3be   : > { %v1066_v44 = vmul.f32 1.442695, %v1065_v41 }
 0x3bf   : > { %v822_v42 = vpop.xlane.xlu1 %821 }
 0x3c0   : > { %v823_v43 = vsub.f32 %v819_v16, %v822_v42 }
 0x3c2   : > { %v824_v45 = vmul.f32 1.442695, %v823_v43 }
 0x3c3   : > { %v726_v46 = vpop.xlane.xlu1 %725  ;;  %v1404_v47 = vpop.xlane.xlu0 %1403 }
 0x3c4   : > { %2533 = vpow2.f32 %v824_v45  ;;  %v727_v48 = vsub.f32 %v722_v19, %v726_v46  ;;  %v1405_v49 = vsub.f32 %v1401_v22, %v1404_v47  ;;  %v1998_v45 = vld [vmem:[#allocation10 + $0x8] sm:$0xff]  ;;  %v1997_v46 = vld [vmem:[#allocation10] sm:$0xff] }
 0x3c5   : > { %2535 = vpow2.f32 %v1066_v44  ;;  %v2000_v44 = vld [vmem:[#allocation10 + $0x18] sm:$0xff] }
 0x3c6   : > { %v728_v50 = vmul.f32 1.442695, %v727_v48  ;;  %v1406_v51 = vmul.f32 1.442695, %v1405_v49  ;;  %2430 = vmatpush3.msra.mxu0 %v2000_v44 }
 0x3c7   : > { %v1234_v52 = vpop.xlane.xlu1 %1233  ;;  %2431 = vmatprep.subr.mxu0 %v2778_v9 }
 0x3c8   : > { %2537 = vpow2.f32 %v728_v50  ;;  %v1235_v53 = vsub.f32 %v1231_v24, %v1234_v52 }
 0x3c9   : > { %2539 = vpow2.f32 %v1406_v51 }
 0x3ca   : > { %v1236_v56 = vmul.f32 1.442695, %v1235_v53 }
 0x3cb   : > { %v1574_v57 = vpop.xlane.xlu1 %1573  ;;  %v1744_v63 = vpop.xlane.xlu0 %1743 }
 0x3cc   : > { %2541 = vpow2.f32 %v1236_v56  ;;  %v1575_v1 = vsub.f32 %v1571_v29, %v1574_v57  ;;  %v1745_v2 = vsub.f32 %v1741_v32, %v1744_v63 }
 0x3ce   : > { %v1576_v3 = vmul.f32 1.442695, %v1575_v1  ;;  %v1746_v4 = vmul.f32 1.442695, %v1745_v2 }
 0x3cf   : > { %v1914_v5 = vpop.xlane.xlu1 %1913 }
 0x3d0   : > { %2543 = vpow2.f32 %v1576_v3  ;;  %v1915_v6 = vsub.f32 %v1911_v37, %v1914_v5 }
 0x3d1   : > { %v2534_v7 = vpop.eup %2533  ;;  %2545 = vpow2.f32 %v1746_v4 }
 0x3d2   : > { %v1916_v8 = vmul.f32 1.442695, %v1915_v6  ;;  %v826_v10 = vsel %vm723_vm10, %v2534_v7, 0.0  ;;  %v2536_v11 = vpop.eup %2535 }
 0x3d3   : > { %827 = vadd.xlane.f32.xlu0 %v826_v10  ;;  %v1068_v13 = vsel %vm723_vm10, %v2536_v11, 0.0 }
 0x3d4   : > { %2547 = vpow2.f32 %v1916_v8 }
 0x3d5   : > { %v2538_v12 = vpop.eup %2537 }
 0x3d6   : > { %v730_v14 = vsel %vm723_vm10, %v2538_v12, 0.0  ;;  %v2540_v15 = vpop.eup %2539 }
 0x3d7   : > { %1069 = vadd.xlane.f32.xlu0 %v1068_v13  ;;  %731 = vadd.xlane.f32.xlu1 %v730_v14  ;;  %v1408_v17 = vsel %vm723_vm10, %v2540_v15, 0.0  ;;  %v2258_v13 = vld [vmem:[%s3241_s7] ss:$0 sm:$0xff] }
 0x3d9   : > { %v2542_v16 = vpop.eup %2541 }
 0x3da   : > { %v1238_v18 = vsel %vm723_vm10, %v2542_v16, 0.0 }
 0x3db   : > { %1409 = vadd.xlane.f32.xlu0 %v1408_v17  ;;  %1239 = vadd.xlane.f32.xlu1 %v1238_v18 }
 0x3dd   : > { %v2544_v19 = vpop.eup %2543 }
 0x3de   : > { %v2546_v20 = vpop.eup %2545  ;;  %v1578_v21 = vsel %vm723_vm10, %v2544_v19, 0.0 }
 0x3df   : > { %v1748_v22 = vsel %vm723_vm10, %v2546_v20, 0.0  ;;  %1579 = vadd.xlane.f32.xlu1 %v1578_v21 }
 0x3e0   : > { %1749 = vadd.xlane.f32.xlu0 %v1748_v22 }
 0x3e1   : > { %v2548_v23 = vpop.eup %2547 }
 0x3e2   : > { %v1918_v24 = vsel %vm723_vm10, %v2548_v23, 0.0 }
 0x3e3   : > { %1919 = vadd.xlane.f32.xlu1 %v1918_v24 }
 0x45c   : > { %v828_v25 = vpop.xlane.xlu0 %827 }
 0x45d   : > { %2549 = vrcp.f32 %v828_v25 }
 0x460   : > { %v732_v26 = vpop.xlane.xlu1 %731  ;;  %v1070_v27 = vpop.xlane.xlu0 %1069 }
 0x461   : > { %2551 = vrcp.f32 %v732_v26 }
 0x462   : > { %2553 = vrcp.f32 %v1070_v27 }
 0x464   : > { %v1240_v28 = vpop.xlane.xlu1 %1239  ;;  %v1410_v29 = vpop.xlane.xlu0 %1409 }
 0x465   : > { %2555 = vrcp.f32 %v1240_v28 }
 0x466   : > { %2557 = vrcp.f32 %v1410_v29 }
 0x468   : > { %v1580_v32 = vpop.xlane.xlu1 %1579 }
 0x469   : > { %2559 = vrcp.f32 %v1580_v32  ;;  %v1750_v36 = vpop.xlane.xlu0 %1749 }
 0x46a   : > { %v2550_v30 = vpop.eup %2549  ;;  %2561 = vrcp.f32 %v1750_v36 }
 0x46b   : > { %v830_v31 = vmul.f32 %v2550_v30, %v2534_v7 }
 0x46c   : > { %v1920_v38 = vpop.xlane.xlu1 %1919 }
 0x46d   : > { %2362 = vmatmul.mubr.msk.f32.vlgmr.msra.gmra.mxu1 %vm723_vm10, %v830_v31  ;;  %2563 = vrcp.f32 %v1920_v38 }
 0x46e   : > { %2365 = vmatpush3.msra.mxu1 %v3086_v54  ;;  %2366 = vmatprep.mubr.msk.f32.mxu1 %vm2779_vm1, %v2778_v9  ;;  %v2552_v33 = vpop.eup %2551 }
 0x46f   : > { %2374 = vmatprep.subr.mxu1 %v2778_v9  ;;  %v734_v34 = vmul.f32 %v2552_v33, %v2538_v12  ;;  %v2554_v35 = vpop.eup %2553 }
 0x470   : > { %v1072_v54 = vmul.f32 %v2554_v35, %v2536_v11 }
 0x471   : > { %2367 = vmatmul.mubr.msk.f32.vlgmr.msra.gmra.mxu1 %vm723_vm10, %v734_v34 }
 0x472   : > { %2375 = vmatpush3.msra.mxu1 %v3088_v55  ;;  %2376 = vmatprep.mubr.msk.f32.mxu1 %vm2779_vm1, %v2778_v9  ;;  %v2556_v37 = vpop.eup %2555 }
 0x473   : > { %2384 = vmatprep.subr.mxu1 %v2778_v9  ;;  %v1242_v55 = vmul.f32 %v2556_v37, %v2542_v16  ;;  %v2558_v39 = vpop.eup %2557 }
 0x474   : > { %v1412_v40 = vmul.f32 %v2558_v39, %v2540_v15 }
 0x475   : > { %2377 = vmatmul.mubr.msk.f32.vlgmr.msra.gmra.mxu1 %vm723_vm10, %v1072_v54 }
 0x476   : > { %2385 = vmatpush3.msra.mxu1 %v3095_v58  ;;  %2386 = vmatprep.mubr.msk.f32.mxu1 %vm2779_vm1, %v2778_v9  ;;  %v2560_v41 = vpop.eup %2559 }
 0x477   : > { %2394 = vmatprep.subr.mxu1 %v2778_v9  ;;  %v1582_v58 = vmul.f32 %v2560_v41, %v2544_v19  ;;  %v2562_v42 = vpop.eup %2561 }
 0x479   : > { %2387 = vmatmul.mubr.msk.f32.vlgmr.msra.gmra.mxu1 %vm723_vm10, %v1242_v55 }
 0x47a   : > { %2395 = vmatpush3.msra.mxu1 %v3097_v59  ;;  %2396 = vmatprep.mubr.msk.f32.mxu1 %vm2779_vm1, %v2778_v9  ;;  %v1752_v59 = vmul.f32 %v2562_v42, %v2546_v20  ;;  %v2564_v43 = vpop.eup %2563 }
 0x47b   : > { %2404 = vmatprep.subr.mxu1 %v2778_v9 }
 0x47d   : > { %2397 = vmatmul.mubr.msk.f32.vlgmr.msra.gmra.mxu1 %vm723_vm10, %v1412_v40 }
 0x47e   : > { %2405 = vmatpush3.msra.mxu1 %v3099_v60  ;;  %2406 = vmatprep.mubr.msk.f32.mxu1 %vm2779_vm1, %v2778_v9  ;;  %v1922_v60 = vmul.f32 %v2564_v43, %v2548_v23 }
 0x47f   : > { %2414 = vmatprep.subr.mxu1 %v2778_v9 }
 0x481   : > { %2407 = vmatmul.mubr.msk.f32.vlgmr.msra.gmra.mxu1 %vm723_vm10, %v1582_v58 }
 0x482   : > { %2415 = vmatpush3.msra.mxu1 %v3102_v61  ;;  %2416 = vmatprep.mubr.msk.f32.mxu1 %vm2779_vm1, %v2778_v9  ;;  %v1999_v61 = vld [vmem:[#allocation10 + $0x10] sm:$0xff] }
 0x483   : > { %2424 = vmatprep.subr.mxu1 %v2778_v9  ;;  %2432 = vmatpush3.msra.mxu0 %v1999_v61 }
 0x484   : > { %2433 = vmatprep.subr.mxu0 %v2778_v9 }
 0x485   : > { %2417 = vmatmul.mubr.msk.f32.vlgmr.msra.gmra.mxu1 %vm723_vm10, %v1752_v59  ;;  %2434 = vmatpush3.msra.mxu0 %v1998_v45 }
 0x486   : > { %2425 = vmatpush3.msra.mxu1 %v3104_v62  ;;  %2426 = vmatprep.mubr.msk.f32.mxu1 %vm2779_vm1, %v2778_v9 }
 0x487   : > { %2435 = vmatprep.subr.mxu0 %v2778_v9 }
 0x488   : > { %2436 = vmatpush3.msra.mxu0 %v1997_v46 }
 0x489   : > { %2427 = vmatmul.mubr.msk.f32.vlgmr.msra.gmra.mxu1 %vm723_vm10, %v1922_v60 }
 0x52d   : > { %v900_v62 = vpop.f32.mrf.mxu1 }
 0x52f   : > { %v2363_v47 = vpop.f32.mrf.mxu1 }
 0x531   : > { %v973_v48 = vpop.f32.mrf.mxu1 }
 0x532   : > { %v974_v57 = vadd.f32 %v973_v48, %v900_v62 }
 0x533   : > { %v2368_v49 = vpop.f32.mrf.mxu1 }
 0x535   : > { %v1142_v50 = vpop.f32.mrf.mxu1 }
 0x536   : > { %v1146_v1 = vadd.f32 %v1142_v50, %v974_v57 }
 0x537   : > { %v2378_v51 = vpop.f32.mrf.mxu1 }
 0x539   : > { %v1312_v52 = vpop.f32.mrf.mxu1 }
 0x53a   : > { %v1316_v3 = vadd.f32 %v1312_v52, %v1146_v1 }
 0x53b   : > { %v2388_v53 = vpop.f32.mrf.mxu1 }
 0x53d   : > { %v1482_v56 = vpop.f32.mrf.mxu1 }
 0x53e   : > { %v1486_v5 = vadd.f32 %v1482_v56, %v1316_v3 }
 0x53f   : > { %v2398_v63 = vpop.f32.mrf.mxu1 }
 0x541   : > { %v1652_v2 = vpop.f32.mrf.mxu1 }
 0x542   : > { %v1656_v6 = vadd.f32 %v1652_v2, %v1486_v5 }
 0x543   : > { %v2408_v4 = vpop.f32.mrf.mxu1 }
 0x545   : > { %v1822_v9 = vpop.f32.mrf.mxu1 }
 0x546   : > { %v1826_v8 = vadd.f32 %v1822_v9, %v1656_v6 }
 0x547   : > { %v2418_v7 = vpop.f32.mrf.mxu1 }
 0x549   : > { %v1992_v10 = vpop.f32.mrf.mxu1 }
 0x54a   : > { %v1996_v11 = vadd.f32 %v1992_v10, %v1826_v8 }
 0x54b   : > { %v2428_v12 = vpop.f32.mrf.mxu1 }
 0x54c   : > { %2438 = vmatmul.mubr.msk.f32.vlgmr.msra.gmra.mxu0 %vm382_vm0, %v1996_v11 }
 0x60c   : > { %v2077_v14 = vpop.f32.mrf.mxu0 }
 0x60d   : > { %v2078_v15 = vadd.f32 %v2258_v13, %v2077_v14 }
 0x60e   : > { %v2439_v16 = vpop.f32.mrf.mxu0 }
 0x60f   : > { %v2081_v17 = vadd.f32 %v2078_v15, %v3008_v0 }
 0x611   : > { %2082 = vst.msk [vmem:[%s378_s16] sm:$0xff] %vm382_vm0, %v2081_v17 }
 0x612   : > { %2710 = shalt.err (!%p2707_p11)
}
 0x613   : > { %s2711_s19 = scalar_lea.hbm %s2095_s20, 128  ;;  %s2715_s15 = scalar_lea.hbm %s3242_s8, 256 }
 0x614   : > { %p2712_p13 = scmp.ne.s32.totalorder %s2095_s20, %s2711_s19  ;;  %p2716_p4 = scmp.lt.s32.totalorder %s2095_s20, %s3242_s8 }
 0x615   : > { %p2717_p6 = scmp.lt.s32.totalorder %s2715_s15, %s2711_s19 }
 0x616   : > { %p2713_p1 = pnand %p2712_p13, %p3268_p7 }
 0x617   : > { %p2718_p5 = por %p2717_p6, %p2716_p4 }
 0x618   : > { %p2714_p3 = pneg %p2713_p1 }
 0x61a   : > { %p2719_p8 = pnand %p2718_p5, %p2714_p3 }
 0x61c   : > { %2722 = shalt.err (!%p2719_p8)
}
 0x61d   : > { %2458 = dma.vmem_to_hbm [thread:$0]  (%p3268_p7), %s2098_s10, 128, %s2095_s20, %s2084_s4  }
 0x61e PF: > { %s2109_s14 = sand.u32 1, %s2757_s27   ;;  %p3269_p10 = scmp.ne.s32.totalorder %s3258_s9, 0 }
 0x61f   : > { %p3270_p0 = scmp.ge.s32.totalorder %s2769_s30, 2  ;;  %s2110_s16 = scalar_lea.sflag [#allocation4], %s2109_s14 }
 0x621   : > { %p2478_p12 = pnand %p3270_p0, %p3269_p10 }
 0x623   : > { %p2479_p2 = pneg %p2478_p12 }
 0x625   : > { %2752 = dma.done.wait (%p2479_p2), %s2110_s16, 128  }
 0x626   : > { %2754 = vsyncadd (%p2479_p2), %s2110_s16, 4294967168  ;;  %p23_p9 = scmp.ge.s32.totalorder %s2927_s21, 4   ;;  %s3271_s27 = smov %s2761_s28 }
 0x627   : > { %s3272_s28 = smov %s2765_s29  ;;  %s3273_s29 = smov %s2938_s24 }
 0x628   : > { %s3274_s30 = smov %s2927_s21  ;;  %25 = sbr.rel (!%p23_p9) target bundleno = 11 (0xb), region = 113 }
 0x62d   :  { %2115 = vsyncpa [#allocation3], 1 }
 0x62e   :  { %2117 = vsyncpa [#allocation3 + $0x1], 1 }
 0x62f   :  { %2118 = vsyncpa [#allocation6], 1 }
 0x630   :  { %2119 = vsyncpa [#allocation9], 1 }
 0x631   :  { %2120 = vsyncpa [#allocation4], 1 }
 0x632   :  { %2122 = vsyncpa [#allocation4 + $0x1], 1 }

</bundles_post_ra>
